<compile_context>
chip_gen: v7x
topology: tpu7x:2x2x1
jax: 0.10.0
libtpu: 0.0.40
codegen_flags: <defaults>
</compile_context>

<pallas_src>
import jax
import jax.numpy as jnp
from jax.experimental import pallas as pl
from jax.experimental.pallas import tpu as pltpu

_VMEM_LIMIT = 48 * 1024 * 1024  # headroom below v7x's 64 MiB physical VMEM


# ----------------------------------------------------------------------------- kernel
def _adaptive_block_kernel(xh_ref, h_ref, cell_ref, v_ref,
                           wsent_ref, bsent_ref,
                           wv_ref, bv_ref, wg_ref, bg_ref, ws_ref, bs_ref,
                           wz_ref, bz_ref, wm_ref, bm_ref,
                           scores_ref, alpha_ref, beta_ref):
    f32 = jnp.float32
    cdt = wv_ref.dtype  # MXU compute dtype (bf16 weights); accumulate in f32

    xh = xh_ref[...]                  # [T, E+H]  fused [x_t, h_{t-1}]
    h = h_ref[...].astype(f32)        # [T, H]    decoder hiddens
    cell = cell_ref[...].astype(f32)  # [T, H]    LSTM cells
    v = v_ref[...]                    # [K, H]    spatial features of this batch element

    # Sentinel: s_t = sigmoid([x, h_prev] @ W_sent + b_sent) * tanh(cells)
    pre = jnp.dot(xh.astype(cdt), wsent_ref[...],
                  preferred_element_type=f32) + bsent_ref[...]
    s = jax.nn.sigmoid(pre) * jnp.tanh(cell)                                       # [T, H]

    # Attention projections (MXU, bf16 in / f32 out).
    gv = jnp.dot(v.astype(cdt), wv_ref[...], preferred_element_type=f32) + bv_ref[...]  # [K, A]
    gg = jnp.dot(h.astype(cdt), wg_ref[...], preferred_element_type=f32) + bg_ref[...]  # [T, A]
    gs = jnp.dot(s.astype(cdt), ws_ref[...], preferred_element_type=f32) + bs_ref[...]  # [T, A]

    wz = wz_ref[...]   # [1, A]  affine_h (attention) weight, f32 (VPU/XLU path)
    bz = bz_ref[...]   # [1, 1]

    # z[t, k] = w_z . tanh(gv[k] + gg[t]) + b_z
    content = jnp.tanh(gv[None, :, :] + gg[:, None, :])                 # [T, K, A]
    z = jnp.sum(content * wz[None, :, :], axis=-1) + bz                 # [T, K]
    # z_ext[t] = w_z . tanh(gs[t] + gg[t]) + b_z     (content_s = affine_s(s)+affine_g(h))
    z_ext = jnp.sum(jnp.tanh(gs + gg) * wz, axis=-1, keepdims=True) + bz  # [T, 1]

    # alpha = softmax over the K regions.
    m1 = jnp.max(z, axis=-1, keepdims=True)
    e1 = jnp.exp(z - m1)
    alpha = e1 / jnp.sum(e1, axis=-1, keepdims=True)                    # [T, K]

    # beta = last column of softmax([z, z_ext]) (without materializing the concat).
    m2 = jnp.maximum(m1, z_ext)
    e_ext = jnp.exp(z_ext - m2)
    beta = e_ext / (jnp.sum(jnp.exp(z - m2), axis=-1, keepdims=True) + e_ext)  # [T, 1]

    # c_t = alpha @ V ;  c_hat = beta * s + (1 - beta) * c_t
    c_t = jnp.dot(alpha.astype(cdt), v.astype(cdt), preferred_element_type=f32)  # [T, H]
    c_hat = beta * s + (1.0 - beta) * c_t

    # Vocab readout fused in: scores = (c_hat + h) @ Wm + bm
    scores = jnp.dot((c_hat + h).astype(cdt), wm_ref[...],
                     preferred_element_type=f32) + bm_ref[...]           # [T, Vocab]

    scores_ref[...] = scores.astype(scores_ref.dtype)
    alpha_ref[...] = alpha.astype(alpha_ref.dtype)
    beta_ref[...] = beta.astype(beta_ref.dtype)


# ----------------------------------------------------------------------------- wrapper
@jax.jit
def adaptive_block_forward(x, hiddens, cells, V, params):
    B, T, E = x.shape
    H = hiddens.shape[-1]
    K = V.shape[1]
    A = params["Wv"].shape[1]
    Vc = params["Wm"].shape[1]

    # h_{t-1}: zeros at t=0 (init_hidden), previous hidden otherwise; fuse with x so the
    # sentinel is one long-K matmul per batch element.
    h_prev = jnp.concatenate(
        [jnp.zeros((B, 1, H), hiddens.dtype), hiddens[:, :-1, :]], axis=1)
    xh = jnp.concatenate([x, h_prev], axis=-1)                      # [B, T, E+H]

    batched = lambda d1, d2: pl.BlockSpec((None, d1, d2), lambda b: (b, 0, 0))
    resident = lambda shape: pl.BlockSpec(shape, lambda b: (0, 0))  # constant block -> stays in VMEM

    out_shape = (
        jax.ShapeDtypeStruct((B, T, Vc), jnp.float32),   # scores
        jax.ShapeDtypeStruct((B, T, K), jnp.float32),    # alpha
        jax.ShapeDtypeStruct((B, T, 1), jnp.float32),    # beta
    )
    return pl.pallas_call(
        _adaptive_block_kernel,
        out_shape=out_shape,
        grid=(B,),
        in_specs=[
            batched(T, E + H),                   # [x, h_prev]
            batched(T, H),                       # hiddens
            batched(T, H),                       # cells
            batched(K, H),                       # V
            resident((E + H, H)), resident((1, H)),   # sentinel (fused W, pre-summed b)
            resident((H, A)), resident((1, A)),       # affine_v
            resident((H, A)), resident((1, A)),       # affine_g
            resident((H, A)), resident((1, A)),       # affine_s
            resident((1, A)), resident((1, 1)),       # affine_h (attention, row vector)
            resident((H, Vc)), resident((1, Vc)),     # mlp
        ],
        out_specs=(batched(T, Vc), batched(T, K), batched(T, 1)),
        compiler_params=pltpu.CompilerParams(
            dimension_semantics=("parallel",),
            vmem_limit_bytes=_VMEM_LIMIT,
        ),
    )(xh, hiddens, cells, V,
      params["W_sent"], params["b_sent"],
      params["Wv"], params["bv"], params["Wg"], params["bg"],
      params["Ws"], params["bs"], params["wz"], params["bz"],
      params["Wm"], params["bm"])


# ----------------------------------------------------------------------------- params / ref
def init_params(key, embed_size, hidden_size, attn_embed_size, vocab_size,
                param_dtype=jnp.bfloat16):
    """Weights stored once in kernel-friendly layout: pre-transposed ([in, out]),
    sentinel projections fused + biases pre-summed, big matrices in bf16."""
    ks = jax.random.split(key, 7)

    def lin_init(k, fan_in, fan_out):
        kw, kb = jax.random.split(k)
        bound = float(fan_in) ** -0.5
        w = jax.random.uniform(kw, (fan_in, fan_out), jnp.float32, -bound, bound)
        b = jax.random.uniform(kb, (1, fan_out), jnp.float32, -bound, bound)
        return w, b

    wx, bx = lin_init(ks[0], embed_size, hidden_size)         # affine_x (sentinel)
    whh, bhh = lin_init(ks[1], hidden_size, hidden_size)      # affine_h (sentinel)
    wv, bv = lin_init(ks[2], hidden_size, attn_embed_size)    # affine_v
    wg, bg = lin_init(ks[3], hidden_size, attn_embed_size)    # affine_g
    ws, bs = lin_init(ks[4], hidden_size, attn_embed_size)    # affine_s
    wh, bh = lin_init(ks[5], attn_embed_size, 1)              # affine_h (attention)
    wm, bm = lin_init(ks[6], hidden_size, vocab_size)         # mlp

    return {
        "W_sent": jnp.concatenate([wx, whh], axis=0).astype(param_dtype),  # [E+H, H]
        "b_sent": bx + bhh,                                                # [1, H] f32
        "Wv": wv.astype(param_dtype), "bv": bv,
        "Wg": wg.astype(param_dtype), "bg": bg,
        "Ws": ws.astype(param_dtype), "bs": bs,
        "wz": wh.T,                     # [1, A] f32 (tiny, elementwise path)
        "bz": bh,                       # [1, 1] f32
        "Wm": wm.astype(param_dtype), "bm": bm,
    }


def adaptive_block_reference(x, hiddens, cells, V, params):
    """Pure-JAX reference with the same bf16-weight numerics as the kernel."""
    f32 = jnp.float32
    cdt = params["Wv"].dtype
    lin = lambda a, w, b: jnp.dot(a.astype(cdt), w, preferred_element_type=f32) + b

    B, T, _ = x.shape
    H = hiddens.shape[-1]
    h_prev = jnp.concatenate(
        [jnp.zeros((B, 1, H), hiddens.dtype), hiddens[:, :-1, :]], axis=1)
    xh = jnp.concatenate([x, h_prev], axis=-1)
    gate = jax.nn.sigmoid(lin(xh, params["W_sent"], params["b_sent"]))
    s_t = gate * jnp.tanh(cells.astype(f32))

    gv = lin(V, params["Wv"], params["bv"])                  # [B, K, A]
    gg = lin(hiddens, params["Wg"], params["bg"])            # [B, T, A]
    gs = lin(s_t, params["Ws"], params["bs"])                # [B, T, A]

    wz = params["wz"][0]
    bz = params["bz"][0, 0]
    content = jnp.tanh(gv[:, None, :, :] + gg[:, :, None, :])             # [B, T, K, A]
    z = jnp.sum(content * wz, axis=-1) + bz                               # [B, T, K]
    z_ext = jnp.sum(jnp.tanh(gs + gg) * wz, axis=-1, keepdims=True) + bz  # [B, T, 1]

    alpha = jax.nn.softmax(z, axis=-1)
    beta = jax.nn.softmax(jnp.concatenate([z, z_ext], axis=-1), axis=-1)[..., -1:]

    c_t = jnp.einsum("btk,bkh->bth", alpha.astype(cdt), V.astype(cdt),
                     preferred_element_type=f32)
    c_hat = beta * s_t + (1.0 - beta) * c_t
    scores = lin(c_hat + hiddens.astype(f32), params["Wm"], params["bm"])
    return scores, alpha, beta


# ----------------------------------------------------------------------------- demo
if __name__ == "__main__":
    # Small, lane-friendly shapes: H / attn embed multiples of 128, vocab multiple of 128.
    B, T, E, H, A, K, VOCAB = 2, 8, 64, 128, 128, 8, 256

    key = jax.random.PRNGKey(0)
    kx, kh, kc, kv, kp = jax.random.split(key, 5)
    x = jax.random.normal(kx, (B, T, E), jnp.float32)        # word/image embeddings
    hiddens = jax.random.normal(kh, (B, T, H), jnp.float32)  # LSTM hiddens
    cells = jax.random.normal(kc, (B, T, H), jnp.float32)    # LSTM cells
    V = jax.random.normal(kv, (B, K, H), jnp.float32)        # K spatial features
    params = init_params(kp, E, H, A, VOCAB)

    scores, alpha, beta = jax.block_until_ready(
        adaptive_block_forward(x, hiddens, cells, V, params))

    assert scores.shape == (B, T, VOCAB)
    assert alpha.shape == (B, T, K)
    assert beta.shape == (B, T, 1)

    ref_scores, ref_alpha, ref_beta = adaptive_block_reference(x, hiddens, cells, V, params)
    for got, ref, name in ((scores, ref_scores, "scores"),
                           (alpha, ref_alpha, "alpha"),
                           (beta, ref_beta, "beta")):
        err = float(jnp.max(jnp.abs(got - ref)))
        assert err < 3e-2, f"{name} mismatch vs reference: max abs err {err}"

    print("KERNEL_OK")
</pallas_src>

<mosaic_0001>
module attributes {stable_mosaic.version = 11 : i64} {
  func.func @_adaptive_block_kernel(%arg0: i32, %arg1: memref<1x8x192xf32, #tpu.memory_space<vmem>>, %arg2: memref<1x8x128xf32, #tpu.memory_space<vmem>>, %arg3: memref<1x8x128xf32, #tpu.memory_space<vmem>>, %arg4: memref<1x8x128xf32, #tpu.memory_space<vmem>>, %arg5: memref<192x128xbf16, #tpu.memory_space<vmem>>, %arg6: memref<1x128xf32, #tpu.memory_space<vmem>>, %arg7: memref<128x128xbf16, #tpu.memory_space<vmem>>, %arg8: memref<1x128xf32, #tpu.memory_space<vmem>>, %arg9: memref<128x128xbf16, #tpu.memory_space<vmem>>, %arg10: memref<1x128xf32, #tpu.memory_space<vmem>>, %arg11: memref<128x128xbf16, #tpu.memory_space<vmem>>, %arg12: memref<1x128xf32, #tpu.memory_space<vmem>>, %arg13: memref<1x128xf32, #tpu.memory_space<vmem>>, %arg14: memref<1x1xf32, #tpu.memory_space<vmem>>, %arg15: memref<128x256xbf16, #tpu.memory_space<vmem>>, %arg16: memref<1x256xf32, #tpu.memory_space<vmem>>, %arg17: memref<1x8x256xf32, #tpu.memory_space<vmem>>, %arg18: memref<1x8x8xf32, #tpu.memory_space<vmem>>, %arg19: memref<1x8x1xf32, #tpu.memory_space<vmem>>) attributes {dimension_semantics = [#tpu.dimension_semantics<parallel>], iteration_bounds = array<i64: 2>, scalar_prefetch = 0 : i64, scratch_operands = 0 : i64, tpu.core_type = #tpu.core_type<tc>, window_params = [{transform_indices = @transform_0, window_bounds = array<i64: 1, 8, 192>}, {transform_indices = @transform_1, window_bounds = array<i64: 1, 8, 128>}, {transform_indices = @transform_2, window_bounds = array<i64: 1, 8, 128>}, {transform_indices = @transform_3, window_bounds = array<i64: 1, 8, 128>}, {pipeline_mode = #tpu.pipeline_mode<synchronous>, transform_indices = @transform_4, window_bounds = array<i64: 192, 128>}, {pipeline_mode = #tpu.pipeline_mode<synchronous>, transform_indices = @transform_5, window_bounds = array<i64: 1, 128>}, {pipeline_mode = #tpu.pipeline_mode<synchronous>, transform_indices = @transform_6, window_bounds = array<i64: 128, 128>}, {pipeline_mode = #tpu.pipeline_mode<synchronous>, transform_indices = @transform_7, window_bounds = array<i64: 1, 128>}, {pipeline_mode = #tpu.pipeline_mode<synchronous>, transform_indices = @transform_8, window_bounds = array<i64: 128, 128>}, {pipeline_mode = #tpu.pipeline_mode<synchronous>, transform_indices = @transform_9, window_bounds = array<i64: 1, 128>}, {pipeline_mode = #tpu.pipeline_mode<synchronous>, transform_indices = @transform_10, window_bounds = array<i64: 128, 128>}, {pipeline_mode = #tpu.pipeline_mode<synchronous>, transform_indices = @transform_11, window_bounds = array<i64: 1, 128>}, {pipeline_mode = #tpu.pipeline_mode<synchronous>, transform_indices = @transform_12, window_bounds = array<i64: 1, 128>}, {pipeline_mode = #tpu.pipeline_mode<synchronous>, transform_indices = @transform_13, window_bounds = array<i64: 1, 1>}, {pipeline_mode = #tpu.pipeline_mode<synchronous>, transform_indices = @transform_14, window_bounds = array<i64: 128, 256>}, {pipeline_mode = #tpu.pipeline_mode<synchronous>, transform_indices = @transform_15, window_bounds = array<i64: 1, 256>}, {transform_indices = @transform_16, window_bounds = array<i64: 1, 8, 256>}, {transform_indices = @transform_17, window_bounds = array<i64: 1, 8, 8>}, {transform_indices = @transform_18, window_bounds = array<i64: 1, 8, 1>}]} {
    %c0 = arith.constant 0 : index
    %c0_0 = arith.constant 0 : index
    %c0_1 = arith.constant 0 : index
    %0 = vector.load %arg1[%c0, %c0_0, %c0_1] : memref<1x8x192xf32, #tpu.memory_space<vmem>>, vector<1x8x192xf32>
    %1 = vector.shape_cast %0 : vector<1x8x192xf32> to vector<8x192xf32>
    %c0_2 = arith.constant 0 : index
    %c0_3 = arith.constant 0 : index
    %c0_4 = arith.constant 0 : index
    %2 = vector.load %arg2[%c0_2, %c0_3, %c0_4] : memref<1x8x128xf32, #tpu.memory_space<vmem>>, vector<1x8x128xf32>
    %3 = vector.shape_cast %2 : vector<1x8x128xf32> to vector<8x128xf32>
    %c0_5 = arith.constant 0 : index
    %c0_6 = arith.constant 0 : index
    %c0_7 = arith.constant 0 : index
    %4 = vector.load %arg3[%c0_5, %c0_6, %c0_7] : memref<1x8x128xf32, #tpu.memory_space<vmem>>, vector<1x8x128xf32>
    %5 = vector.shape_cast %4 : vector<1x8x128xf32> to vector<8x128xf32>
    %c0_8 = arith.constant 0 : index
    %c0_9 = arith.constant 0 : index
    %c0_10 = arith.constant 0 : index
    %6 = vector.load %arg4[%c0_8, %c0_9, %c0_10] : memref<1x8x128xf32, #tpu.memory_space<vmem>>, vector<1x8x128xf32>
    %7 = vector.shape_cast %6 : vector<1x8x128xf32> to vector<8x128xf32>
    %8 = arith.truncf %1 : vector<8x192xf32> to vector<8x192xbf16>
    %c0_11 = arith.constant 0 : index
    %c0_12 = arith.constant 0 : index
    %9 = vector.load %arg5[%c0_11, %c0_12] : memref<192x128xbf16, #tpu.memory_space<vmem>>, vector<192x128xbf16>
    %cst = arith.constant dense<0.000000e+00> : vector<8x128xf32>
    %10 = tpu.matmul %8, %9, %cst {dimension_numbers = #tpu.dot_dimension_numbers<[1], [0], [0], [1], [0, 0, 1, 1], [], []>} : vector<8x192xbf16>, vector<192x128xbf16>, vector<8x128xf32> -> vector<8x128xf32>
    %c0_13 = arith.constant 0 : index
    %c0_14 = arith.constant 0 : index
    %11 = vector.load %arg6[%c0_13, %c0_14] : memref<1x128xf32, #tpu.memory_space<vmem>>, vector<1x128xf32>
    %12 = vector.broadcast %11 : vector<1x128xf32> to vector<8x128xf32>
    %13 = arith.addf %10, %12 : vector<8x128xf32>
    %14 = arith.negf %13 : vector<8x128xf32>
    %15 = math.exp %14 : vector<8x128xf32>
    %cst_15 = arith.constant 1.000000e+00 : f32
    %16 = vector.broadcast %cst_15 : f32 to vector<8x128xf32>
    %17 = arith.addf %16, %15 : vector<8x128xf32>
    %18 = arith.divf %16, %17 : vector<8x128xf32>
    %19 = math.tanh %5 : vector<8x128xf32>
    %20 = arith.mulf %18, %19 : vector<8x128xf32>
    %21 = arith.truncf %7 : vector<8x128xf32> to vector<8x128xbf16>
    %c0_16 = arith.constant 0 : index
    %c0_17 = arith.constant 0 : index
    %22 = vector.load %arg7[%c0_16, %c0_17] : memref<128x128xbf16, #tpu.memory_space<vmem>>, vector<128x128xbf16>
    %cst_18 = arith.constant dense<0.000000e+00> : vector<8x128xf32>
    %23 = tpu.matmul %21, %22, %cst_18 {dimension_numbers = #tpu.dot_dimension_numbers<[1], [0], [0], [1], [0, 0, 1, 1], [], []>} : vector<8x128xbf16>, vector<128x128xbf16>, vector<8x128xf32> -> vector<8x128xf32>
    %c0_19 = arith.constant 0 : index
    %c0_20 = arith.constant 0 : index
    %24 = vector.load %arg8[%c0_19, %c0_20] : memref<1x128xf32, #tpu.memory_space<vmem>>, vector<1x128xf32>
    %25 = vector.broadcast %24 : vector<1x128xf32> to vector<8x128xf32>
    %26 = arith.addf %23, %25 : vector<8x128xf32>
    %27 = arith.truncf %3 : vector<8x128xf32> to vector<8x128xbf16>
    %c0_21 = arith.constant 0 : index
    %c0_22 = arith.constant 0 : index
    %28 = vector.load %arg9[%c0_21, %c0_22] : memref<128x128xbf16, #tpu.memory_space<vmem>>, vector<128x128xbf16>
    %cst_23 = arith.constant dense<0.000000e+00> : vector<8x128xf32>
    %29 = tpu.matmul %27, %28, %cst_23 {dimension_numbers = #tpu.dot_dimension_numbers<[1], [0], [0], [1], [0, 0, 1, 1], [], []>} : vector<8x128xbf16>, vector<128x128xbf16>, vector<8x128xf32> -> vector<8x128xf32>
    %c0_24 = arith.constant 0 : index
    %c0_25 = arith.constant 0 : index
    %30 = vector.load %arg10[%c0_24, %c0_25] : memref<1x128xf32, #tpu.memory_space<vmem>>, vector<1x128xf32>
    %31 = vector.broadcast %30 : vector<1x128xf32> to vector<8x128xf32>
    %32 = arith.addf %29, %31 : vector<8x128xf32>
    %33 = arith.truncf %20 : vector<8x128xf32> to vector<8x128xbf16>
    %c0_26 = arith.constant 0 : index
    %c0_27 = arith.constant 0 : index
    %34 = vector.load %arg11[%c0_26, %c0_27] : memref<128x128xbf16, #tpu.memory_space<vmem>>, vector<128x128xbf16>
    %cst_28 = arith.constant dense<0.000000e+00> : vector<8x128xf32>
    %35 = tpu.matmul %33, %34, %cst_28 {dimension_numbers = #tpu.dot_dimension_numbers<[1], [0], [0], [1], [0, 0, 1, 1], [], []>} : vector<8x128xbf16>, vector<128x128xbf16>, vector<8x128xf32> -> vector<8x128xf32>
    %c0_29 = arith.constant 0 : index
    %c0_30 = arith.constant 0 : index
    %36 = vector.load %arg12[%c0_29, %c0_30] : memref<1x128xf32, #tpu.memory_space<vmem>>, vector<1x128xf32>
    %37 = vector.broadcast %36 : vector<1x128xf32> to vector<8x128xf32>
    %38 = arith.addf %35, %37 : vector<8x128xf32>
    %c0_31 = arith.constant 0 : index
    %c0_32 = arith.constant 0 : index
    %39 = vector.load %arg13[%c0_31, %c0_32] : memref<1x128xf32, #tpu.memory_space<vmem>>, vector<1x128xf32>
    %c0_33 = arith.constant 0 : index
    %c0_34 = arith.constant 0 : index
    %40 = vector.load %arg14[%c0_33, %c0_34] : memref<1x1xf32, #tpu.memory_space<vmem>>, vector<1x1xf32>
    %41 = vector.shape_cast %26 : vector<8x128xf32> to vector<1x8x128xf32>
    %42 = vector.shape_cast %32 : vector<8x128xf32> to vector<8x1x128xf32>
    %43 = vector.broadcast %41 : vector<1x8x128xf32> to vector<8x8x128xf32>
    %44 = vector.broadcast %42 : vector<8x1x128xf32> to vector<8x8x128xf32>
    %45 = arith.addf %43, %44 : vector<8x8x128xf32>
    %46 = math.tanh %45 : vector<8x8x128xf32>
    %47 = vector.shape_cast %39 : vector<1x128xf32> to vector<1x1x128xf32>
    %48 = vector.broadcast %47 : vector<1x1x128xf32> to vector<8x8x128xf32>
    %49 = arith.mulf %46, %48 : vector<8x8x128xf32>
    %cst_35 = arith.constant dense<0.000000e+00> : vector<8x8xf32>
    %50 = vector.multi_reduction <add>, %49, %cst_35 [2] : vector<8x8x128xf32> to vector<8x8xf32>
    %51 = vector.broadcast %40 : vector<1x1xf32> to vector<8x8xf32>
    %52 = arith.addf %50, %51 : vector<8x8xf32>
    %53 = arith.addf %38, %32 : vector<8x128xf32>
    %54 = math.tanh %53 : vector<8x128xf32>
    %55 = vector.broadcast %39 : vector<1x128xf32> to vector<8x128xf32>
    %56 = arith.mulf %54, %55 : vector<8x128xf32>
    %cst_36 = arith.constant dense<0.000000e+00> : vector<8xf32>
    %57 = vector.multi_reduction <add>, %56, %cst_36 [1] : vector<8x128xf32> to vector<8xf32>
    %58 = vector.shape_cast %57 : vector<8xf32> to vector<8x1xf32>
    %59 = vector.broadcast %40 : vector<1x1xf32> to vector<8x1xf32>
    %60 = arith.addf %58, %59 : vector<8x1xf32>
    %cst_37 = arith.constant dense<0xFF800000> : vector<8xf32>
    %61 = vector.multi_reduction <maximumf>, %52, %cst_37 [1] : vector<8x8xf32> to vector<8xf32>
    %62 = vector.shape_cast %61 : vector<8xf32> to vector<8x1xf32>
    %63 = vector.broadcast %62 : vector<8x1xf32> to vector<8x8xf32>
    %64 = arith.subf %52, %63 : vector<8x8xf32>
    %65 = math.exp %64 : vector<8x8xf32>
    %cst_38 = arith.constant dense<0.000000e+00> : vector<8xf32>
    %66 = vector.multi_reduction <add>, %65, %cst_38 [1] : vector<8x8xf32> to vector<8xf32>
    %67 = vector.shape_cast %66 : vector<8xf32> to vector<8x1xf32>
    %68 = vector.broadcast %67 : vector<8x1xf32> to vector<8x8xf32>
    %69 = arith.divf %65, %68 : vector<8x8xf32>
    %70 = arith.maximumf %62, %60 : vector<8x1xf32>
    %71 = arith.subf %60, %70 : vector<8x1xf32>
    %72 = math.exp %71 : vector<8x1xf32>
    %73 = vector.broadcast %70 : vector<8x1xf32> to vector<8x8xf32>
    %74 = arith.subf %52, %73 : vector<8x8xf32>
    %75 = math.exp %74 : vector<8x8xf32>
    %cst_39 = arith.constant dense<0.000000e+00> : vector<8xf32>
    %76 = vector.multi_reduction <add>, %75, %cst_39 [1] : vector<8x8xf32> to vector<8xf32>
    %77 = vector.shape_cast %76 : vector<8xf32> to vector<8x1xf32>
    %78 = arith.addf %77, %72 : vector<8x1xf32>
    %79 = arith.divf %72, %78 : vector<8x1xf32>
    %80 = arith.truncf %69 : vector<8x8xf32> to vector<8x8xbf16>
    %81 = arith.truncf %7 : vector<8x128xf32> to vector<8x128xbf16>
    %cst_40 = arith.constant dense<0.000000e+00> : vector<8x128xf32>
    %82 = tpu.matmul %80, %81, %cst_40 {dimension_numbers = #tpu.dot_dimension_numbers<[1], [0], [0], [1], [0, 0, 1, 1], [], []>} : vector<8x8xbf16>, vector<8x128xbf16>, vector<8x128xf32> -> vector<8x128xf32>
    %83 = vector.broadcast %79 : vector<8x1xf32> to vector<8x128xf32>
    %84 = arith.mulf %83, %20 : vector<8x128xf32>
    %cst_41 = arith.constant 1.000000e+00 : f32
    %85 = vector.broadcast %cst_41 : f32 to vector<8x1xf32>
    %86 = arith.subf %85, %79 : vector<8x1xf32>
    %87 = vector.broadcast %86 : vector<8x1xf32> to vector<8x128xf32>
    %88 = arith.mulf %87, %82 : vector<8x128xf32>
    %89 = arith.addf %84, %88 : vector<8x128xf32>
    %90 = arith.addf %89, %3 : vector<8x128xf32>
    %91 = arith.truncf %90 : vector<8x128xf32> to vector<8x128xbf16>
    %c0_42 = arith.constant 0 : index
    %c0_43 = arith.constant 0 : index
    %92 = vector.load %arg15[%c0_42, %c0_43] : memref<128x256xbf16, #tpu.memory_space<vmem>>, vector<128x256xbf16>
    %cst_44 = arith.constant dense<0.000000e+00> : vector<8x256xf32>
    %93 = tpu.matmul %91, %92, %cst_44 {dimension_numbers = #tpu.dot_dimension_numbers<[1], [0], [0], [1], [0, 0, 1, 1], [], []>} : vector<8x128xbf16>, vector<128x256xbf16>, vector<8x256xf32> -> vector<8x256xf32>
    %c0_45 = arith.constant 0 : index
    %c0_46 = arith.constant 0 : index
    %94 = vector.load %arg16[%c0_45, %c0_46] : memref<1x256xf32, #tpu.memory_space<vmem>>, vector<1x256xf32>
    %95 = vector.broadcast %94 : vector<1x256xf32> to vector<8x256xf32>
    %96 = arith.addf %93, %95 : vector<8x256xf32>
    %c0_47 = arith.constant 0 : index
    %c0_48 = arith.constant 0 : index
    %c0_49 = arith.constant 0 : index
    %97 = vector.load %arg17[%c0_47, %c0_48, %c0_49] : memref<1x8x256xf32, #tpu.memory_space<vmem>>, vector<1x8x256xf32>
    %98 = vector.shape_cast %97 : vector<1x8x256xf32> to vector<8x256xf32>
    %99 = vector.shape_cast %96 : vector<8x256xf32> to vector<1x8x256xf32>
    tpu.vector_store %arg17[%c0_47, %c0_48, %c0_49], %99 {strides = array<i32>} : memref<1x8x256xf32, #tpu.memory_space<vmem>>, vector<1x8x256xf32>,
    %c0_50 = arith.constant 0 : index
    %c0_51 = arith.constant 0 : index
    %c0_52 = arith.constant 0 : index
    %100 = vector.load %arg18[%c0_50, %c0_51, %c0_52] : memref<1x8x8xf32, #tpu.memory_space<vmem>>, vector<1x8x8xf32>
    %101 = vector.shape_cast %100 : vector<1x8x8xf32> to vector<8x8xf32>
    %102 = vector.shape_cast %69 : vector<8x8xf32> to vector<1x8x8xf32>
    tpu.vector_store %arg18[%c0_50, %c0_51, %c0_52], %102 {strides = array<i32>} : memref<1x8x8xf32, #tpu.memory_space<vmem>>, vector<1x8x8xf32>,
    %c0_53 = arith.constant 0 : index
    %c0_54 = arith.constant 0 : index
    %c0_55 = arith.constant 0 : index
    %103 = vector.load %arg19[%c0_53, %c0_54, %c0_55] : memref<1x8x1xf32, #tpu.memory_space<vmem>>, vector<1x8x1xf32>
    %104 = vector.shape_cast %103 : vector<1x8x1xf32> to vector<8x1xf32>
    %105 = vector.shape_cast %79 : vector<8x1xf32> to vector<1x8x1xf32>
    tpu.vector_store %arg19[%c0_53, %c0_54, %c0_55], %105 {strides = array<i32>} : memref<1x8x1xf32, #tpu.memory_space<vmem>>, vector<1x8x1xf32>,
    return
  }
  func.func @transform_0(%arg0: i32) -> (i32, i32, i32) {
    %c0_i32 = arith.constant 0 : i32
    %c0_i32_0 = arith.constant 0 : i32
    %c0_i32_1 = arith.constant 0 : i32
    return %arg0, %c0_i32, %c0_i32_0 : i32, i32, i32
  }
  func.func @transform_1(%arg0: i32) -> (i32, i32, i32) {
    %c0_i32 = arith.constant 0 : i32
    %c0_i32_0 = arith.constant 0 : i32
    %c0_i32_1 = arith.constant 0 : i32
    return %arg0, %c0_i32, %c0_i32_0 : i32, i32, i32
  }
  func.func @transform_2(%arg0: i32) -> (i32, i32, i32) {
    %c0_i32 = arith.constant 0 : i32
    %c0_i32_0 = arith.constant 0 : i32
    %c0_i32_1 = arith.constant 0 : i32
    return %arg0, %c0_i32, %c0_i32_0 : i32, i32, i32
  }
  func.func @transform_3(%arg0: i32) -> (i32, i32, i32) {
    %c0_i32 = arith.constant 0 : i32
    %c0_i32_0 = arith.constant 0 : i32
    %c0_i32_1 = arith.constant 0 : i32
    return %arg0, %c0_i32, %c0_i32_0 : i32, i32, i32
  }
  func.func @transform_4(%arg0: i32) -> (i32, i32) {
    %c0_i32 = arith.constant 0 : i32
    %c0_i32_0 = arith.constant 0 : i32
    %c0_i32_1 = arith.constant 0 : i32
    return %c0_i32, %c0_i32_0 : i32, i32
  }
  func.func @transform_5(%arg0: i32) -> (i32, i32) {
    %c0_i32 = arith.constant 0 : i32
    %c0_i32_0 = arith.constant 0 : i32
    %c0_i32_1 = arith.constant 0 : i32
    return %c0_i32, %c0_i32_0 : i32, i32
  }
  func.func @transform_6(%arg0: i32) -> (i32, i32) {
    %c0_i32 = arith.constant 0 : i32
    %c0_i32_0 = arith.constant 0 : i32
    %c0_i32_1 = arith.constant 0 : i32
    return %c0_i32, %c0_i32_0 : i32, i32
  }
  func.func @transform_7(%arg0: i32) -> (i32, i32) {
    %c0_i32 = arith.constant 0 : i32
    %c0_i32_0 = arith.constant 0 : i32
    %c0_i32_1 = arith.constant 0 : i32
    return %c0_i32, %c0_i32_0 : i32, i32
  }
  func.func @transform_8(%arg0: i32) -> (i32, i32) {
    %c0_i32 = arith.constant 0 : i32
    %c0_i32_0 = arith.constant 0 : i32
    %c0_i32_1 = arith.constant 0 : i32
    return %c0_i32, %c0_i32_0 : i32, i32
  }
  func.func @transform_9(%arg0: i32) -> (i32, i32) {
    %c0_i32 = arith.constant 0 : i32
    %c0_i32_0 = arith.constant 0 : i32
    %c0_i32_1 = arith.constant 0 : i32
    return %c0_i32, %c0_i32_0 : i32, i32
  }
  func.func @transform_10(%arg0: i32) -> (i32, i32) {
    %c0_i32 = arith.constant 0 : i32
    %c0_i32_0 = arith.constant 0 : i32
    %c0_i32_1 = arith.constant 0 : i32
    return %c0_i32, %c0_i32_0 : i32, i32
  }
  func.func @transform_11(%arg0: i32) -> (i32, i32) {
    %c0_i32 = arith.constant 0 : i32
    %c0_i32_0 = arith.constant 0 : i32
    %c0_i32_1 = arith.constant 0 : i32
    return %c0_i32, %c0_i32_0 : i32, i32
  }
  func.func @transform_12(%arg0: i32) -> (i32, i32) {
    %c0_i32 = arith.constant 0 : i32
    %c0_i32_0 = arith.constant 0 : i32
    %c0_i32_1 = arith.constant 0 : i32
    return %c0_i32, %c0_i32_0 : i32, i32
  }
  func.func @transform_13(%arg0: i32) -> (i32, i32) {
    %c0_i32 = arith.constant 0 : i32
    %c0_i32_0 = arith.constant 0 : i32
    %c0_i32_1 = arith.constant 0 : i32
    return %c0_i32, %c0_i32_0 : i32, i32
  }
  func.func @transform_14(%arg0: i32) -> (i32, i32) {
    %c0_i32 = arith.constant 0 : i32
    %c0_i32_0 = arith.constant 0 : i32
    %c0_i32_1 = arith.constant 0 : i32
    return %c0_i32, %c0_i32_0 : i32, i32
  }
  func.func @transform_15(%arg0: i32) -> (i32, i32) {
    %c0_i32 = arith.constant 0 : i32
    %c0_i32_0 = arith.constant 0 : i32
    %c0_i32_1 = arith.constant 0 : i32
    return %c0_i32, %c0_i32_0 : i32, i32
  }
  func.func @transform_16(%arg0: i32) -> (i32, i32, i32) {
    %c0_i32 = arith.constant 0 : i32
    %c0_i32_0 = arith.constant 0 : i32
    %c0_i32_1 = arith.constant 0 : i32
    return %arg0, %c0_i32, %c0_i32_0 : i32, i32, i32
  }
  func.func @transform_17(%arg0: i32) -> (i32, i32, i32) {
    %c0_i32 = arith.constant 0 : i32
    %c0_i32_0 = arith.constant 0 : i32
    %c0_i32_1 = arith.constant 0 : i32
    return %arg0, %c0_i32, %c0_i32_0 : i32, i32, i32
  }
  func.func @transform_18(%arg0: i32) -> (i32, i32, i32) {
    %c0_i32 = arith.constant 0 : i32
    %c0_i32_0 = arith.constant 0 : i32
    %c0_i32_1 = arith.constant 0 : i32
    return %arg0, %c0_i32, %c0_i32_0 : i32, i32, i32
  }
}

</mosaic_0001>

<bundles_post_ra>
// kernel: adaptive_block_forward.1
= control target key start
LH: loop header
LB: loop body
LE: loop exit
PB: predicated region body
PF: predicated region fallthrough
CT: control target
= control target key end

     0   :  { %s4068_s0 = inlined_call_operand.vmem [shape: f32[2,8,192], index: 0, kind: input, shape index: {}]   ;;  %s4069_s1 = inlined_call_operand.vmem [shape: f32[2,8,128], index: 1, kind: input, shape index: {}]   ;;  %s4070_s2 = inlined_call_operand.hbm [shape: f32[2,8,128], index: 2, kind: input, shape index: {}]   ;;  %s4071_s3 = inlined_call_operand.hbm [shape: f32[2,8,128], index: 3, kind: input, shape index: {}]   ;;  %s4072_s4 = inlined_call_operand.hbm [shape: bf16[192,128], index: 4, kind: input, shape index: {}]   ;;  %s4073_s5 = inlined_call_operand.vmem [shape: f32[1,128], index: 5, kind: input, shape index: {}]   ;;  %s4074_s6 = inlined_call_operand.vmem [shape: bf16[128,128], index: 6, kind: input, shape index: {}]   ;;  %s4075_s7 = inlined_call_operand.vmem [shape: f32[1,128], index: 7, kind: input, shape index: {}]   ;;  %s4076_s8 = inlined_call_operand.hbm [shape: bf16[128,128], index: 8, kind: input, shape index: {}]   ;;  %s4077_s9 = inlined_call_operand.vmem [shape: f32[1,128], index: 9, kind: input, shape index: {}]   ;;  %s4078_s10 = inlined_call_operand.hbm [shape: bf16[128,128], index: 10, kind: input, shape index: {}]   ;;  %s4079_s11 = inlined_call_operand.vmem [shape: f32[1,128], index: 11, kind: input, shape index: {}]   ;;  %s4080_s12 = inlined_call_operand.vmem [shape: f32[1,128], index: 12, kind: input, shape index: {}]   ;;  %s4081_s13 = inlined_call_operand.<no memory space> [shape: f32[1,1], index: 13, kind: input, shape index: {}]   ;;  %s4082_s14 = inlined_call_operand.hbm [shape: bf16[128,256], index: 14, kind: input, shape index: {}]   ;;  %s4083_s15 = inlined_call_operand.vmem [shape: f32[1,256], index: 15, kind: input, shape index: {}]   ;;  %s4084_s16 = inlined_call_operand.hbm [shape: f32[2,8,256], index: 16, kind: output, shape index: {0}]   ;;  %s4085_s17 = inlined_call_operand.hbm [shape: f32[2,8,8], index: 17, kind: output, shape index: {1}]   ;;  %s4086_s18 = inlined_call_operand.vmem [shape: f32[2,8,1], index: 18, kind: output, shape index: {2}]  }
   0x1   :  { %4095 = sst [smem:[#allocation26_spill]] %s4068_s0  ;;  %v24_v0 = vstv %s4081_s13 }
   0x2   :  { %4096 = sst [smem:[#allocation27_spill]] %s4069_s1  ;;  %25 = vst [vmem:[#allocation2] sm:$0x1] %v24_v0 }
   0x3   :  { %4097 = sst [smem:[#allocation28_spill]] %s4070_s2 }
   0x4   :  { %4098 = sst [smem:[#allocation29_spill]] %s4072_s4 }
   0x5   :  { %4099 = sst [smem:[#allocation30_spill]] %s4076_s8 }
   0x6   :  { %4100 = sst [smem:[#allocation31_spill]] %s4078_s10 }
   0x7   :  { %4101 = sst [smem:[#allocation32_spill]] %s4079_s11 }
   0x8   :  { %4102 = sst [smem:[#allocation33_spill]] %s4080_s12 }
   0x9   :  { %4103 = sst [smem:[#allocation34_spill]] %s4082_s14 }
   0xa   :  { %4104 = sst [smem:[#allocation35_spill]] %s4083_s15 }
   0xb   :  { %4105 = sst [smem:[#allocation36_spill]] %s4084_s16 }
   0xc   :  { %4106 = sst [smem:[#allocation37_spill]] %s4085_s17 }
   0xd   :  { %4107 = sst [smem:[#allocation38_spill]] %s4086_s18 }
   0xe   :  { %26 = vsyncpa [#allocation4], 0 }
   0xf   :  { %28 = vsyncpa [#allocation4 + $0x1], 0 }
  0x10   :  { %29 = vsyncpa [#allocation7], 0 }
  0x11   :  { %31 = vsyncpa [#allocation7 + $0x1], 0 }
  0x12   :  { %32 = vsyncpa [#allocation10], 0 }
  0x13   :  { %33 = vsyncpa [#allocation13], 0 }
  0x14   :  { %34 = vsyncpa [#allocation5], 0 }
  0x15   :  { %36 = vsyncpa [#allocation5 + $0x1], 0 }
  0x16   :  { %37 = vsyncpa [#allocation16], 0 }
  0x17   :  { %39 = vsyncpa [#allocation16 + $0x1], 0  ;;  %s3277_s29 = smov 0   ;;  %s3279_s30 = smov 0  }
  0x18   :  { %s3281_s0 = smov 0   ;;  %s3283_s19 = smov 0  }
  0x19 LB: > { %4108 = sst [smem:[#allocation24_spill]] %s3157_s0  ;;  %s3163_s13 = smov [#allocation8]   ;;  %s3161_s19 = sphi %s3283_s19, %s4147_s19   ;;  %s3157_s0 = sphi %s3281_s0, %s4144_s0   ;;  %s3153_s30 = sphi %s3279_s30, %s4146_s30   ;;  %s3149_s29 = sphi %s3277_s29, %s4145_s29  }
  0x1a   : > { %s496_s1 = sshll.u32 %s3163_s13, 4  ;;  %s3298_s20 = sadd.s32 4294967295, %s3161_s19   ;;  %s3303_s1 = int_to_ptr.vmem [resolvable:$true] %s496_s1 }
  0x1b   : > { %p2444_p0 = scmp.ge.s32.totalorder %s3161_s19, 1  ;;  %p4090_p1 = scmp.eq.s32.totalorder %s3298_s20, 0 }
  0x1c   : > { %p484_p2 = scmp.lt.s32.totalorder %s3161_s19, 3  ;;  %s3164_s22 = smov [#allocation9]  }
  0x1d   : > { %s518_s2 = sshll.u32 %s3164_s22, 4  ;;  %s3165_s24 = smov [#allocation11]   ;;  %s3318_s2 = int_to_ptr.vmem [resolvable:$true] %s518_s2 }
  0x1e   : > { %p3305_p3 = pnand %p2444_p0, %p484_p2  ;;  %s534_s25 = sshll.u32 %s3165_s24, 4  ;;  %s3320_s25 = int_to_ptr.vmem [resolvable:$true] %s534_s25 }
  0x1f   : > { %s4111_s4 = sld [smem:[#allocation29_spill]] }
  0x20   : > { %s4109_s21 = scalar_select %p3305_p3, 1, 0 }
  0x21   : > { %p2656_p5 = pneg %p3305_p3 }
  0x23   : > { %p3314_p6 = pnand %p2656_p5, %p4090_p1 }
  0x25   : > { %s2875_s28 = scalar_lea.hbm %s4111_s4, 1536  ;;  %p3330_p8 = pneg %p3314_p6 }
  0x26   : > { %p2876_p7 = scmp.ne.s32.totalorder %s4111_s4, %s2875_s28  ;;  %p2882_p11 = scmp.lt.u32.totalorder %s2875_s28, %s4111_s4 }
  0x28   : > { %p2878_p9 = pnand %p3330_p8, %p2876_p7 }
  0x2a   : > { %p2879_p10 = pneg %p2878_p9 }
  0x2c   : > { %p2884_p12 = pnand %p2882_p11, %p2879_p10 }
  0x2e   : > { %2887 = shalt.err (!%p2884_p12)
}
  0x2f   : > { %s2888_s16 = scalar_lea.vmem %s3303_s1, 1536  ;;  %p2896_p5 = scmp.lt.s32.totalorder %s3303_s1, %s3303_s1 }
  0x30   : > { %p2889_p13 = scmp.ne.s32.totalorder %s3303_s1, %s2888_s16  ;;  %p2897_p4 = scmp.lt.s32.totalorder %s2888_s16, %s2888_s16 }
  0x32   : > { %p2891_p0 = pnand %p2889_p13, %p3330_p8  ;;  %p2898_p7 = por %p2897_p4, %p2896_p5 }
  0x34   : > { %p2892_p2 = pneg %p2891_p0 }
  0x36   : > { %p2899_p9 = pnand %p2898_p7, %p2892_p2 }
  0x38   : > { %2902 = shalt.err (!%p2899_p9)
}
  0x39   : > { %s3166_s26 = smov 64   ;;  %s3167_s15 = smov 4  }
  0x3a   : > { %2659 = dma.hbm_to_vmem [thread:$0]  (!%p3314_p6), %s4111_s4, 1536, %s3303_s1, [#allocation7], %s3166_s26, %s3166_s26, %s3167_s15  }
  0x3b   : > { %s4113_s8 = sld [smem:[#allocation30_spill]] }
  0x41   : > { %s2903_s16 = scalar_lea.hbm %s4113_s8, 1024 }
  0x42   : > { %p2904_p4 = scmp.ne.s32.totalorder %s4113_s8, %s2903_s16  ;;  %p2910_p12 = scmp.lt.u32.totalorder %s2903_s16, %s4113_s8 }
  0x44   : > { %p2906_p10 = pnand %p2904_p4, %p3330_p8 }
  0x46   : > { %p2907_p11 = pneg %p2906_p10 }
  0x48   : > { %p2912_p13 = pnand %p2910_p12, %p2907_p11 }
  0x4a   : > { %2915 = shalt.err (!%p2912_p13)
}
  0x4b   : > { %s2916_s1 = scalar_lea.vmem %s3318_s2, 1024  ;;  %p2924_p7 = scmp.lt.s32.totalorder %s3318_s2, %s3318_s2 }
  0x4c   : > { %p2917_p0 = scmp.ne.s32.totalorder %s3318_s2, %s2916_s1  ;;  %p2925_p9 = scmp.lt.s32.totalorder %s2916_s1, %s2916_s1 }
  0x4e   : > { %p2919_p2 = pnand %p2917_p0, %p3330_p8  ;;  %p2926_p4 = por %p2925_p9, %p2924_p7 }
  0x50   : > { %p2920_p5 = pneg %p2919_p2 }
  0x52   : > { %p2927_p10 = pnand %p2926_p4, %p2920_p5 }
  0x54   : > { %2930 = shalt.err (!%p2927_p10)
}
  0x55   : > { %2662 = dma.hbm_to_vmem [thread:$0]  (!%p3314_p6), %s4113_s8, 1024, %s3318_s2, [#allocation10], %s3166_s26, %s3166_s26, %s3167_s15  }
  0x56   : > { %s4114_s10 = sld [smem:[#allocation31_spill]] }
  0x5c   : > { %s2931_s27 = scalar_lea.hbm %s4114_s10, 1024 }
  0x5d   : > { %p2932_p11 = scmp.ne.s32.totalorder %s4114_s10, %s2931_s27  ;;  %p2938_p0 = scmp.lt.u32.totalorder %s2931_s27, %s4114_s10 }
  0x5f   : > { %p2934_p12 = pnand %p2932_p11, %p3330_p8 }
  0x61   : > { %p2935_p13 = pneg %p2934_p12 }
  0x63   : > { %p2940_p2 = pnand %p2938_p0, %p2935_p13 }
  0x65   : > { %2943 = shalt.err (!%p2940_p2)
}
  0x66   : > { %s2944_s2 = scalar_lea.vmem %s3320_s25, 1024  ;;  %p2952_p4 = scmp.lt.s32.totalorder %s3320_s25, %s3320_s25 }
  0x67   : > { %p2945_p5 = scmp.ne.s32.totalorder %s3320_s25, %s2944_s2  ;;  %p2953_p10 = scmp.lt.s32.totalorder %s2944_s2, %s2944_s2 }
  0x69   : > { %p2947_p7 = pnand %p2945_p5, %p3330_p8  ;;  %p2954_p11 = por %p2953_p10, %p2952_p4 }
  0x6b   : > { %p2948_p9 = pneg %p2947_p7 }
  0x6d   : > { %p2955_p12 = pnand %p2954_p11, %p2948_p9 }
  0x6f   : > { %2958 = shalt.err (!%p2955_p12)
}
  0x70   : > { %2665 = dma.hbm_to_vmem [thread:$0]  (!%p3314_p6), %s4114_s10, 1024, %s3320_s25, [#allocation10], %s3166_s26, %s3166_s26, %s3167_s15  }
  0x71   : > { %s3168_s12 = smov [#allocation12]   ;;  %s4115_s14 = sld [smem:[#allocation34_spill]] }
  0x72   : > { %s556_s17 = sshll.u32 %s3168_s12, 4  ;;  %s557_s17 = int_to_ptr.vmem [resolvable:$true] %s556_s17 }
  0x77   : > { %s2959_s28 = scalar_lea.hbm %s4115_s14, 2048 }
  0x78   : > { %p2960_p13 = scmp.ne.s32.totalorder %s4115_s14, %s2959_s28  ;;  %p2966_p5 = scmp.lt.u32.totalorder %s2959_s28, %s4115_s14 }
  0x7a   : > { %p2962_p0 = pnand %p2960_p13, %p3330_p8 }
  0x7c   : > { %p2963_p2 = pneg %p2962_p0 }
  0x7e   : > { %p2968_p7 = pnand %p2966_p5, %p2963_p2 }
  0x80   : > { %2971 = shalt.err (!%p2968_p7)
}
  0x81   : > { %s2972_s25 = scalar_lea.vmem %s557_s17, 2048  ;;  %p2980_p11 = scmp.lt.s32.totalorder %s557_s17, %s557_s17 }
  0x82   : > { %p2973_p9 = scmp.ne.s32.totalorder %s557_s17, %s2972_s25  ;;  %p2981_p12 = scmp.lt.s32.totalorder %s2972_s25, %s2972_s25 }
  0x84   : > { %p2975_p4 = pnand %p2973_p9, %p3330_p8  ;;  %p2982_p1 = por %p2981_p12, %p2980_p11 }
  0x86   : > { %p2976_p10 = pneg %p2975_p4 }
  0x88   : > { %p2983_p3 = pnand %p2982_p1, %p2976_p10 }
  0x8a   : > { %2986 = shalt.err (!%p2983_p3)
}
  0x8b   : > { %s3169_s26 = smov 128   ;;  %s3170_s22 = smov 8  }
  0x8c   : > { %2668 = dma.hbm_to_vmem [thread:$0]  (!%p3314_p6), %s4115_s14, 2048, %s557_s17, [#allocation13], %s3169_s26, %s3169_s26, %s3170_s22  }
  0x8d   : > { %s2443_s11 = sadd.s32 4294967294, %s3161_s19   ;;  %s3426_s12 = sadd.s32 1, %s3161_s19  }
  0x8e   : > { %s101_s18 = ssub.s32 %s3161_s19, %s3426_s12  ;;  %s104_s27 = sadd.s32 1, %s3157_s0 }
  0x8f   : > { %p102_p1 = scmp.eq.s32.totalorder %s101_s18, 0  ;;  %p111_p3 = scmp.ne.s32.totalorder %s3157_s0, %s3153_s30 }
  0x90   : > { %p112_p8 = scmp.eq.s32.totalorder %s3161_s19, 0  ;;  %p117_p13 = scmp.ne.s32.totalorder %s3153_s30, %s3149_s29 }
  0x91   : > { %s3437_s28 = scalar_select %p102_p1, %s3157_s0, %s104_s27  }
  0x92   : > { %p3439_p0 = por %p112_p8, %p111_p3  ;;  %p4118_p2 = scmp.eq.s32.totalorder %s3298_s20, 0 }
  0x93   : > { %4116 = sst [smem:[#allocation25_spill]] %s3437_s28  ;;  %p419_p5 = scmp.eq.s32.totalorder %s3298_s20, 1 }
  0x94   : > { %p3445_p6 = por %p4118_p2, %p117_p13  ;;  %p425_p7 = scmp.eq.s32.totalorder %s2443_s11, 1 }
  0x95   : > { %p2687_p9 = scmp.lt.s32.totalorder %s3161_s19, 2  ;;  %s588_s13 = sand.u32 1, %s3157_s0  }
  0x96   : > { %s4119_s17 = scalar_select %p3445_p6, 1, 0 }
  0x97   : > { %p3452_p4 = por %p419_p5, %p111_p3  ;;  %p3456_p10 = por %p425_p7, %p117_p13 }
  0x98   : > { %s3460_s2 = sshll.u32 %s588_s13, 3  ;;  %s2451_s25 = sshll.u32 %s3161_s19, 7 }
  0x99   : > { %s4120_s24 = scalar_select %p3452_p4, 1, 0 }
  0x9a   : > { %s4121_s16 = scalar_select %p3456_p10, 1, 0 }
  0x9b   : > { %s4122_s15 = sld [smem:[#allocation28_spill]]  ;;  %s592_s11 = scalar_lea.vmem [#allocation3], %s3460_s2 }
  0x9c   : > { %s599_s18 = sshll.u32 %s592_s11, 4  ;;  %p3473_p11 = pnand %p2687_p9, %p3439_p0  ;;  %s3469_s18 = int_to_ptr.vmem [resolvable:$true] %s599_s18 }
  0x9d   : > { %s3480_s26 = scalar_lea.hbm %s4071_s3, %s2451_s25  ;;  %s606_s22 = sand.u32 1, %s3161_s19  }
  0x9e   : > { %s589_s10 = scalar_lea.sflag [#allocation4], %s588_s13  ;;  %p2989_p1 = pneg %p3473_p11 }
  0xa1   : > { %s3466_s1 = scalar_lea.hbm %s4122_s15, %s2451_s25  ;;  %s2992_s28 = scalar_lea.hbm %s4122_s15, 256 }
  0xa2   : > { %s2987_s14 = scalar_lea.hbm %s3466_s1, 128  ;;  %p2993_p13 = scmp.lt.u32.totalorder %s3466_s1, %s4122_s15 }
  0xa3   : > { %p2988_p12 = scmp.ne.s32.totalorder %s3466_s1, %s2987_s14  ;;  %p2994_p0 = scmp.lt.u32.totalorder %s2992_s28, %s2987_s14 }
  0xa4   : > { %p2996_p5 = scmp.lt.u32.totalorder %s2987_s14, %s3466_s1 }
  0xa5   : > { %p2990_p3 = pnand %p2989_p1, %p2988_p12  ;;  %p2995_p2 = por %p2994_p0, %p2993_p13 }
  0xa7   : > { %p2991_p8 = pneg %p2990_p3  ;;  %p2997_p7 = por %p2996_p5, %p2995_p2 }
  0xa9   : > { %p2998_p9 = pnand %p2997_p7, %p2991_p8 }
  0xab   : > { %3001 = shalt.err (!%p2998_p9)
}
  0xac   : > { %s3002_s8 = scalar_lea.vmem %s3469_s18, 128  ;;  %s3171_s13 = smov [#allocation3]  }
  0xad   : > { %p3003_p12 = scmp.ne.s32.totalorder %s3469_s18, %s3002_s8  ;;  %s3007_s25 = sshll.u32 %s3171_s13, 4  ;;  %s3008_s25 = int_to_ptr.vmem [resolvable:$false] %s3007_s25 }
  0xae   : > { %s3009_s0 = scalar_lea.vmem %s3008_s25, 256  ;;  %p3010_p4 = scmp.lt.s32.totalorder %s3469_s18, %s3008_s25 }
  0xaf   : > { %p3005_p3 = pnand %p3003_p12, %p2989_p1  ;;  %p3011_p13 = scmp.lt.s32.totalorder %s3009_s0, %s3002_s8 }
  0xb1   : > { %p3006_p10 = pneg %p3005_p3  ;;  %p3012_p0 = por %p3011_p13, %p3010_p4 }
  0xb3   : > { %p3013_p2 = pnand %p3012_p0, %p3006_p10 }
  0xb5   : > { %3016 = shalt.err (!%p3013_p2)
}
  0xb6   : > { %2672 = dma.hbm_to_vmem [thread:$0]  (!%p3473_p11), %s3466_s1, 128, %s3469_s18, %s589_s10  }
  0xb7   : > { %s610_s14 = scalar_lea.vmem [#allocation6], %s3460_s2  ;;  %s607_s23 = scalar_lea.sflag [#allocation7], %s606_s22 }
  0xb8   : > { %s617_s28 = sshll.u32 %s610_s14, 4  ;;  %s3017_s11 = scalar_lea.hbm %s3480_s26, 128  ;;  %s618_s28 = int_to_ptr.vmem [resolvable:$true] %s617_s28 }
  0xb9   : > { %p3018_p4 = scmp.ne.s32.totalorder %s3480_s26, %s3017_s11  ;;  %s3022_s13 = scalar_lea.hbm %s4071_s3, 256 }
  0xba   : > { %p3023_p5 = scmp.lt.u32.totalorder %s3480_s26, %s4071_s3  ;;  %p3024_p7 = scmp.lt.u32.totalorder %s3022_s13, %s3017_s11 }
  0xbb   : > { %p3020_p10 = pnand %p3018_p4, %p2989_p1  ;;  %p3026_p12 = scmp.lt.u32.totalorder %s3017_s11, %s3480_s26 }
  0xbc   : > { %p3025_p9 = por %p3024_p7, %p3023_p5 }
  0xbd   : > { %p3021_p8 = pneg %p3020_p10 }
  0xbe   : > { %p3027_p3 = por %p3026_p12, %p3025_p9 }
  0xc0   : > { %p3028_p13 = pnand %p3027_p3, %p3021_p8 }
  0xc2   : > { %3031 = shalt.err (!%p3028_p13)
}
  0xc3   : > { %s3032_s10 = scalar_lea.vmem %s618_s28, 128  ;;  %s3172_s2 = smov [#allocation6]  }
  0xc4   : > { %p3033_p0 = scmp.ne.s32.totalorder %s618_s28, %s3032_s10  ;;  %s3037_s1 = sshll.u32 %s3172_s2, 4  ;;  %s3038_s1 = int_to_ptr.vmem [resolvable:$false] %s3037_s1 }
  0xc5   : > { %s3039_s18 = scalar_lea.vmem %s3038_s1, 256  ;;  %p3040_p10 = scmp.lt.s32.totalorder %s618_s28, %s3038_s1 }
  0xc6   : > { %p3035_p2 = pnand %p3033_p0, %p2989_p1  ;;  %p3041_p6 = scmp.lt.s32.totalorder %s3039_s18, %s3032_s10 }
  0xc8   : > { %p3036_p4 = pneg %p3035_p2  ;;  %p3042_p5 = por %p3041_p6, %p3040_p10 }
  0xca   : > { %p3043_p7 = pnand %p3042_p5, %p3036_p4 }
  0xcc   : > { %3046 = shalt.err (!%p3043_p7)
}
  0xcd   : > { %2675 = dma.hbm_to_vmem [thread:$0]  (!%p3473_p11), %s3480_s26, 128, %s618_s28, %s607_s23  }
  0xce   : > { %p4124_p8 = scmp.ne.s32.totalorder %s4109_s21, 0 }
  0xcf   : > { %s3533_s22 = sand.u32 (!%p4124_p8), 1, %s3153_s30   ;;  %p4125_p6 = scmp.ne.s32.totalorder (!%p4124_p8), %s4119_s17, 0 }
  0xd0   : > { %626 = sbr.rel (%p4124_p8) target bundleno = 1887 (0x75f), region = 84  ;;  %s3536_s14 = sshll.u32 (!%p4124_p8), %s3533_s22, 3 }
  0xd1   : > { %s629_s11 = scalar_lea.sflag (!%p4124_p8), [#allocation4], %s3533_s22  ;;  %s632_s4 = scalar_lea.vmem (!%p4124_p8), [#allocation3], %s3536_s14 }
  0xd7   : > { %3120 = dma.done.wait (%p4125_p6), %s629_s11, 128  }
  0xd8   : > { %3122 = vsyncadd (%p4125_p6), %s629_s11, 4294967168  ;;  %s637_s21 = sand.u32 1, %s3298_s20   ;;  %s641_s26 = scalar_lea.vmem [#allocation6], %s3536_s14 }
  0xd9   : > { %s638_s27 = scalar_lea.sflag [#allocation7], %s637_s21 }
  0xda   : > { %3124 = dma.done.wait (%p4125_p6), %s638_s27, 128  }
  0xdb   : > { %3126 = vsyncadd (%p4125_p6), %s638_s27, 4294967168  ;;  %p4126_p11 = scmp.eq.s32.totalorder %s3298_s20, 0 }
  0xdd   : > { %3128 = dma.done.wait (%p4126_p11), [#allocation7], 1536   ;;  %p4127_p1 = pmov %p4126_p11 }
  0xdf   : > { %3130 = vsyncadd (%p4127_p1), [#allocation7], 4294965760  ;;  %p4128_p9 = pmov %p4127_p1 }
  0xe0   : > { %p4129_p12 = pmov %p4127_p1 }
  0xe1   : > { %3132 = dma.done.wait (%p4128_p9), [#allocation10], 2048  }
  0xe2   : > { %3134 = vsyncadd (%p4129_p12), [#allocation10], 4294965248  ;;  %p4130_p3 = pmov %p4127_p1 }
  0xe3   : > { %p4131_p13 = pmov %p4127_p1 }
  0xe4   : > { %3136 = dma.done.wait (%p4130_p3), [#allocation13], 2048  }
  0xe5   : > { %3138 = vsyncadd (%p4131_p13), [#allocation13], 4294965248  ;;  %v3173_v1 = vmov 0   ;;  %v3174_v2 = vmov 0.0   ;;  %vm3175_vm0 = vmmov 0   ;;  %v2739_v3 = vld [vmem:[#allocation8] sm:$0xff]   ;;  %v1252_v60 = vlaneseq }
  0xe6   : > { %861 = vmatprep.subr.bf16.mxu0 %v3173_v1  ;;  %2566 = vmatprep.subr.bf16.mxu1 %v3174_v2  ;;  %v2740_v4 = vld [vmem:[%s4074_s6] sm:$0xff]   ;;  %v2741_v5 = vld [vmem:[#allocation8 + $0x8] sm:$0xff]   ;;  %v2743_v7 = vld [vmem:[#allocation8 + $0x10] sm:$0xff]   ;;  %p733_p0 = scmp.lt.s32.totalorder %s3298_s20, 1  ;;  %s4132_s23 = sld [smem:[#allocation26_spill]]  ;;  %vm857_vm1 = vcmask 523264  }
  0xe7   : > { %2582 = vmatprep.mubr.msk.bf16.mxu1 %vm3175_vm0, %v3174_v2  ;;  %2737 = vset.pattern.permute.xlu0 %v3173_v1  ;;  %v2742_v6 = vld [vmem:[%s4074_s6 + $0x8] sm:$0xff]   ;;  %v2744_v8 = vld [vmem:[%s4074_s6 + $0x10] sm:$0xff]   ;;  %v2745_v9 = vld [vmem:[#allocation8 + $0x18] sm:$0xff]   ;;  %v3176_v58 = vmov 1966171168   ;;  %v3663_v62 = vshrl.u32 %v1252_v60, 7 }
  0xe8   : > { %2738 = vset.pattern.permute.xlu1 %v3173_v1  ;;  %862 = vmatpush1.bf16.msra.mxu0 %v2739_v3  ;;  %v2746_v10 = vld [vmem:[%s4074_s6 + $0x18] sm:$0xff]   ;;  %v2747_v11 = vld [vmem:[#allocation8 + $0x20] sm:$0xff]   ;;  %s3588_s2 = scalar_select %p733_p0, %s3298_s20, 1  ;;  %v2749_v13 = vld [vmem:[#allocation8 + $0x28] sm:$0xff]   ;;  %v1250_v59 = vunpack.c.l.s4 %v3176_v58  ;;  %vm1449_vm2 = vcmask 1041409   ;;  %vm1451_vm3 = vcmask 1042434  }
  0xe9   : > { %2567 = vmatpush3.bf16.msra.mxu1 %v2740_v4  ;;  %863 = vmatprep.subr.bf16.mxu0 %v3173_v1  ;;  %v2748_v12 = vld [vmem:[%s4074_s6 + $0x20] sm:$0xff]   ;;  %v2750_v14 = vld [vmem:[%s4074_s6 + $0x28] sm:$0xff]   ;;  %v2751_v15 = vld [vmem:[#allocation8 + $0x30] sm:$0xff]   ;;  %s4134_s0 = sld [smem:[#allocation33_spill]]  ;;  %vm1453_vm4 = vcmask 1043459   ;;  %vm1455_vm5 = vcmask 1044484  }
  0xea   : > { %2568 = vmatprep.subr.bf16.mxu1 %v3174_v2  ;;  %s2535_s11 = sshll.u32 %s3588_s2, 4  ;;  %v2752_v16 = vld [vmem:[%s4074_s6 + $0x30] sm:$0xff]   ;;  %v2753_v18 = vld [vmem:[#allocation8 + $0x38] sm:$0xff]   ;;  %v2755_v22 = vld [vmem:[#allocation8 + $0x40] sm:$0xff]   ;;  %v1251_v61 = vunpack.c.0.s8 %v1250_v59  ;;  %vm1457_vm6 = vcmask 1045509   ;;  %vm1459_vm7 = vcmask 1046534  }
  0xeb   : > { %v2754_v20 = vld [vmem:[%s4074_s6 + $0x38] sm:$0xff]   ;;  %v2756_v23 = vld [vmem:[#allocation9] sm:$0xff]   ;;  %v2757_v25 = vld [vmem:[#allocation8 + $0x48] sm:$0xff]   ;;  %vm1461_vm8 = vcmask 1047559   ;;  %vm1464_vm9 = vcmask 64512   ;;  %s4135_s18 = sld [smem:[#allocation32_spill]] }
  0xec   : > { %864 = vmatpush1.bf16.msra.mxu0 %v2741_v5  ;;  %s3604_s8 = scalar_lea.vmem %s4132_s23, %s2535_s11  ;;  %v751_v21 = vld [vmem:[%s641_s26] sm:$0xff]  ;;  %v2758_v26 = vld [vmem:[#allocation9 + $0x8] sm:$0xff]   ;;  %v2763_v33 = vld [vmem:[#allocation9 + $0x20] sm:$0xff]   ;;  %s2465_s26 = sshll.u32 %s3588_s2, 3  ;;  %v1254_v4 = vsub.s32 %v1251_v61, %v3663_v62  ;;  %vm1906_vm10 = vcmask 1043456   ;;  %vm2190_vm11 = vcmask 7168  }
  0xed   : > { %2569 = vmatpush3.bf16.msra.mxu1 %v2742_v6  ;;  %865 = vmatprep.subr.bf16.mxu0 %v3173_v1  ;;  %v748_v17 = vld [vmem:[%s3604_s8 + $0x8] sm:$0xff]  ;;  %v3619_v24 = vpack.c.bf16 %v751_v21, %v751_v21  ;;  %v2759_v27 = vld [vmem:[#allocation8 + $0x50] sm:$0xff]   ;;  %v2761_v29 = vld [vmem:[#allocation8 + $0x58] sm:$0xff]   ;;  %s4133_s11 = sld [smem:[#allocation27_spill]]  ;;  %s4136_s27 = sld [smem:[#allocation38_spill]] }
  0xee   : > { %2570 = vmatprep.subr.bf16.mxu1 %v3174_v2  ;;  %v753_v19 = vpack.c.bf16 %v748_v17, %v748_v17  ;;  %v2760_v28 = vld [vmem:[#allocation9 + $0x10] sm:$0xff]   ;;  %v747_v30 = vld [vmem:[%s3604_s8] sm:$0xff]  ;;  %v2764_v34 = vld [vmem:[#allocation9 + $0x28] sm:$0xff]   ;;  %s726_s2 = scalar_lea.vmem [#allocation15], %s3536_s14  ;;  %s4137_s8 = sld [smem:[#allocation37_spill]] }
  0xef   : > { %v2762_v31 = vld [vmem:[#allocation9 + $0x18] sm:$0xff]   ;;  %v752_v32 = vpack.c.bf16 %v747_v30, %v747_v30  ;;  %v2765_v35 = vld [vmem:[#allocation9 + $0x30] sm:$0xff]   ;;  %v2767_v39 = vld [vmem:[#allocation11] sm:$0xff]   ;;  %s2229_s28 = sshll.u32 %s726_s2, 4  ;;  %s2198_s25 = scalar_lea.sflag [#allocation16], %s3533_s22  ;;  %s2230_s28 = int_to_ptr.vmem [resolvable:$true] %s2229_s28 }
  0xf0   : > { %866 = vmatpush1.bf16.msra.mxu0 %v2743_v7  ;;  %2480 = vmatprep.mubr.msk.bf16.mxu0 %vm857_vm1, %v753_v19  ;;  %v2766_v36 = vld [vmem:[#allocation9 + $0x38] sm:$0xff]   ;;  %v2768_v40 = vld [vmem:[#allocation11 + $0x8] sm:$0xff]   ;;  %v2769_v41 = vld [vmem:[#allocation11 + $0x10] sm:$0xff]   ;;  %p4138_p4 = scmp.ne.s32.totalorder %s4120_s24, 0  ;;  %s3177_s10 = smov [#allocation15]  }
  0xf1   : > { %2571 = vmatpush3.bf16.msra.mxu1 %v2744_v8  ;;  %867 = vmatprep.subr.bf16.mxu0 %v3173_v1  ;;  %v2770_v42 = vld [vmem:[#allocation11 + $0x18] sm:$0xff]   ;;  %v2771_v43 = vld [vmem:[#allocation11 + $0x20] sm:$0xff]   ;;  %v2772_v44 = vld [vmem:[#allocation11 + $0x28] sm:$0xff]   ;;  %s3051_s1 = sshll.u32 %s3177_s10, 4  ;;  %s3052_s1 = int_to_ptr.vmem [resolvable:$false] %s3051_s1 }
  0xf2   : > { %2572 = vmatprep.subr.bf16.mxu1 %v3174_v2  ;;  %v2773_v45 = vld [vmem:[#allocation11 + $0x30] sm:$0xff]   ;;  %v2774_v46 = vld [vmem:[#allocation11 + $0x38] sm:$0xff]   ;;  %v750_v63 = vld [vmem:[%s632_s4] sm:$0xff]  ;;  %s3053_s14 = scalar_lea.vmem %s3052_s1, 256  ;;  %p3054_p7 = scmp.lt.s32.totalorder %s2230_s28, %s3052_s1 }
  0xf3   : > { %s741_s21 = scalar_lea.vmem %s4133_s11, %s2465_s26  ;;  %v2467_v51 = vld [vmem:[%s4073_s5] ss:$0 sm:$0xff]  ;;  %s745_s17 = scalar_lea.vmem %s4136_s27, %s2465_s26 }
  0xf4   : > { %868 = vmatpush1.bf16.msra.mxu0 %v2745_v9  ;;  %v3645_v37 = vld [vmem:[%s741_s21] sm:$0xff]  ;;  %s2532_s26 = sshll.u32 %s3298_s20, 7 }
  0xf5   : > { %2573 = vmatpush3.bf16.msra.mxu1 %v2746_v10  ;;  %869 = vmatprep.subr.bf16.mxu0 %v3173_v1  ;;  %v1021_v38 = vpack.c.bf16 %v3645_v37, %v3645_v37  ;;  %s3994_s13 = scalar_lea.hbm %s4137_s8, %s2532_s26 }
  0xf6   : > { %2574 = vmatprep.subr.bf16.mxu1 %v3174_v2 }
  0xf8   : > { %870 = vmatpush1.bf16.msra.mxu0 %v2747_v11 }
  0xf9   : > { %2575 = vmatpush3.bf16.msra.mxu1 %v2748_v12  ;;  %871 = vmatprep.subr.bf16.mxu0 %v3173_v1  ;;  %v3677_v12 = vsub.s32 0, %v3663_v62 }
  0xfa   : > { %2576 = vmatprep.subr.bf16.mxu1 %v3174_v2 }
  0xfc   : > { %872 = vmatpush1.bf16.msra.mxu0 %v2749_v13  ;;  %v2482_v13 = vld [vmem:[%s4075_s7] ss:$0 sm:$0xff] }
  0xfd   : > { %2577 = vmatpush3.bf16.msra.mxu1 %v2750_v14  ;;  %873 = vmatprep.subr.bf16.mxu0 %v3173_v1 }
  0xfe   : > { %2578 = vmatprep.subr.bf16.mxu1 %v3174_v2 }
 0x100   : > { %874 = vmatpush1.bf16.msra.mxu0 %v2751_v15 }
 0x101   : > { %2579 = vmatpush3.bf16.msra.mxu1 %v2752_v16  ;;  %875 = vmatprep.subr.bf16.mxu0 %v3173_v1 }
 0x102   : > { %2580 = vmatprep.subr.bf16.mxu1 %v3174_v2 }
 0x104   : > { %876 = vmatpush1.bf16.msra.mxu0 %v2753_v18 }
 0x105   : > { %2581 = vmatpush3.bf16.msra.mxu1 %v2754_v20  ;;  %877 = vmatprep.subr.bf16.mxu0 %v3173_v1 }
 0x106   : > { %2586 = vmatprep.subr.bf16.mxu1 %v3174_v2 }
 0x108   : > { %2583 = vmatmul.mubr.bf16.vlgmr.msra.gmra.mrb[0].mxu1 %v3619_v24  ;;  %878 = vmatpush1.bf16.msra.mxu0 %v2755_v22 }
 0x109   : > { %2587 = vmatpush3.bf16.msra.mxu1 %v2756_v23  ;;  %879 = vmatprep.subr.bf16.mxu0 %v3173_v1 }
 0x10a   : > { %2588 = vmatprep.subr.bf16.mxu1 %v3174_v2  ;;  %2602 = vmatprep.mubr.msk.bf16.mxu1 %vm3175_vm0, %v3174_v2 }
 0x10c   : > { %880 = vmatpush1.bf16.msra.mxu0 %v2757_v25 }
 0x10d   : > { %2589 = vmatpush3.bf16.msra.mxu1 %v2758_v26  ;;  %881 = vmatprep.subr.bf16.mxu0 %v3173_v1 }
 0x10e   : > { %2590 = vmatprep.subr.bf16.mxu1 %v3174_v2 }
 0x110   : > { %882 = vmatpush1.bf16.msra.mxu0 %v2759_v27 }
 0x111   : > { %2591 = vmatpush3.bf16.msra.mxu1 %v2760_v28  ;;  %883 = vmatprep.subr.bf16.mxu0 %v3173_v1 }
 0x112   : > { %2592 = vmatprep.subr.bf16.mxu1 %v3174_v2 }
 0x114   : > { %884 = vmatpush1.bf16.msra.mxu0 %v2761_v29 }
 0x115   : > { %2593 = vmatpush3.bf16.msra.mxu1 %v2762_v31  ;;  %2606 = vmatprep.subr.bf16.mxu0 %v3174_v2 }
 0x116   : > { %2594 = vmatprep.subr.bf16.mxu1 %v3174_v2 }
 0x117   : > { %894 = vmatmul.mubr.bf16.vlgmr.msra.gmra.mrb[0].mxu0 %v752_v32 }
 0x118   : > { %2622 = vmatprep.mubr.msk.bf16.mxu0 %vm3175_vm0, %v3174_v2  ;;  %2607 = vmatpush3.bf16.msra.mxu0 %v2767_v39 }
 0x119   : > { %2595 = vmatpush3.bf16.msra.mxu1 %v2763_v33  ;;  %2608 = vmatprep.subr.bf16.mxu0 %v3174_v2 }
 0x11a   : > { %2596 = vmatprep.subr.bf16.mxu1 %v3174_v2 }
 0x11c   : > { %2609 = vmatpush3.bf16.msra.mxu0 %v2768_v40 }
 0x11d   : > { %2597 = vmatpush3.bf16.msra.mxu1 %v2764_v34  ;;  %2610 = vmatprep.subr.bf16.mxu0 %v3174_v2 }
 0x11e   : > { %2598 = vmatprep.subr.bf16.mxu1 %v3174_v2 }
 0x120   : > { %2611 = vmatpush3.bf16.msra.mxu0 %v2769_v41 }
 0x121   : > { %2599 = vmatpush3.bf16.msra.mxu1 %v2765_v35  ;;  %2612 = vmatprep.subr.bf16.mxu0 %v3174_v2 }
 0x122   : > { %2600 = vmatprep.subr.bf16.mxu1 %v3174_v2 }
 0x124   : > { %2613 = vmatpush3.bf16.msra.mxu0 %v2770_v42 }
 0x125   : > { %2601 = vmatpush3.bf16.msra.mxu1 %v2766_v36  ;;  %2614 = vmatprep.subr.bf16.mxu0 %v3174_v2 }
 0x128   : > { %2603 = vmatmul.mubr.bf16.vlgmr.msra.gmra.mrb[4].mxu1 %v1021_v38  ;;  %2615 = vmatpush3.bf16.msra.mxu0 %v2771_v43 }
 0x129   : > { %2106 = vmatprep.mubr.bf16.mxu1 %v3173_v1  ;;  %2616 = vmatprep.subr.bf16.mxu0 %v3174_v2  ;;  %v2491_v1 = vld [vmem:[%s4077_s9] ss:$0 sm:$0xff] }
 0x12c   : > { %2617 = vmatpush3.bf16.msra.mxu0 %v2772_v44 }
 0x12d   : > { %2618 = vmatprep.subr.bf16.mxu0 %v3174_v2 }
 0x130   : > { %2619 = vmatpush3.bf16.msra.mxu0 %v2773_v45 }
 0x131   : > { %2620 = vmatprep.subr.bf16.mxu0 %v3174_v2 }
 0x134   : > { %2621 = vmatpush3.bf16.msra.mxu0 %v2774_v46 }
 0x135   : > { %2626 = vmatprep.subr.bf16.mxu0 %v3174_v2 }
 0x1db   : > { %v1015_v47 = vpop.f32.mrb[0].mxu1 }
 0x1dc   : > { %v2584_v48 = vpop.f32.mrb[1].mxu1  ;;  %v1016_v21 = vadd.f32 %v2482_v13, %v1015_v47  ;;  %v3699_v47 = vld [vmem:[%s4134_s0] ss:$0 sm:$0xff]  ;;  %s3047_s0 = scalar_lea.vmem %s2230_s28, 128 }
 0x1dd   : > { %v1018_v49 = vpop.f32.mrb[2].mxu1  ;;  %p3048_p2 = scmp.ne.s32.totalorder %s2230_s28, %s3047_s0  ;;  %p3055_p8 = scmp.lt.s32.totalorder %s3053_s14, %s3047_s0 }
 0x1de   : > { %v2585_v50 = vpop.f32.mrb[3].mxu1 }
 0x1df   : > { %p3049_p10 = pnand %p3048_p2, %p4138_p4  ;;  %p3056_p6 = por %p3055_p8, %p3054_p7 }
 0x1e1   : > { %p3050_p5 = pneg %p3049_p10 }
 0x1e3   : > { %p3057_p11 = pnand %p3056_p6, %p3050_p5 }
 0x1ea   : > { %v895_v52 = vpop.f32.mrb[0].mxu0 }
 0x1eb   : > { %v896_v53 = vadd.f32 %v2467_v51, %v895_v52  ;;  %v897_v54 = vpop.f32.mrb[1].mxu0 }
 0x1ec   : > { %v898_v55 = vpop.f32.mrb[2].mxu0 }
 0x1ed   : > { %v2481_v56 = vmul.f32 -1.442695, %v896_v53  ;;  %v899_v57 = vpop.f32.mrb[3].mxu0 }
 0x1ef   : > { %2799 = vpow2.f32 %v2481_v56 }
 0x1f0   : > { %2801 = vtanh.f32 %v750_v63 }
 0x1f9   : > { %v2800_v0 = vpop.eup %2799 }
 0x1fa   : > { %v904_v3 = vadd.f32 1.0, %v2800_v0  ;;  %v2802_v23 = vpop.eup %2801 }
 0x1fb   : > { %v1127_v5 = vpop.f32.mrb[4].mxu1 }
 0x1fc   : > { %2803 = vrcp.f32 %v904_v3  ;;  %v3671_v6 = vadd.f32 %v2491_v1, %v1127_v5  ;;  %v2604_v7 = vpop.f32.mrb[5].mxu1  ;;  %v3709_v3 = vld [vmem:[#allocation2] ss:$0 sm:$0xff] }
 0x1fd   : > { %v1130_v8 = vpop.f32.mrb[6].mxu1 }
 0x1fe   : > { %v1248_v9 = vcombine.high %v3671_v6, %v3671_v6  ;;  %v1255_v10 = vrot.slane %v3671_v6, %v1254_v4  ;;  %v2605_v11 = vpop.f32.mrb[7].mxu1 }
 0x200   : > { %v1262_v14 = vrot.slane %v1248_v9, %v1254_v4  ;;  %v1263_v15 = vcombine.high %v1255_v10, %v1255_v10  ;;  %v1271_v16 = vrot.slane %v1255_v10, %v1254_v4  ;;  %v1416_v10 = vand.u32 127, %v1252_v60 }
 0x202   : > { %v1264_v17 = vcombine.high %v1262_v14, %v1262_v14  ;;  %v1278_v18 = vrot.slane %v1262_v14, %v1254_v4  ;;  %v1285_v19 = vrot.slane %v1263_v15, %v1254_v4  ;;  %v1293_v20 = vcombine.high %v1271_v16, %v1271_v16 }
 0x203   : > { %v1300_v22 = vrot.slane %v1271_v16, %v3677_v12  ;;  %v3714_v14 = vsub.s32 %v1416_v10, %v3663_v62  ;;  %v3794_v10 = vsub.s32 6, %v3663_v62 }
 0x204   : > { %v1292_v25 = vrot.slane %v1264_v17, %v1254_v4  ;;  %v1295_v26 = vcombine.high %v1285_v19, %v1285_v19  ;;  %v1304_v27 = vrot.slane %v1285_v19, %v3677_v12  ;;  %v1294_v28 = vcombine.high %v1278_v18, %v1278_v18 }
 0x205   : > { %v1308_v29 = vrot.slane %v1293_v20, %v3677_v12  ;;  %v1316_v30 = vrot.slane %v1278_v18, %v3677_v12  ;;  %v1337_v31 = vadd.f32 %v1300_v22, %v1016_v21 }
 0x206   : > { %v2804_v32 = vpop.eup %2803  ;;  %v1296_v33 = vcombine.high %v1292_v25, %v1292_v25  ;;  %v1312_v34 = vrot.slane %v1295_v26, %v3677_v12  ;;  %v1320_v35 = vrot.slane %v1292_v25, %v3677_v12  ;;  %v1338_v39 = vadd.f32 %v1304_v27, %v1016_v21 }
 0x207   : > { %v3688_v36 = vmul.f32 %v2804_v32, %v2802_v23  ;;  %2805 = vtanh.f32 %v1337_v31  ;;  %v1339_v38 = vadd.f32 %v1308_v29, %v1016_v21  ;;  %v1324_v41 = vrot.slane %v1294_v28, %v3677_v12 }
 0x208   : > { %v1340_v40 = vadd.f32 %v1312_v34, %v1016_v21  ;;  %v1341_v43 = vadd.f32 %v1316_v30, %v1016_v21  ;;  %v1342_v44 = vadd.f32 %v1320_v35, %v1016_v21  ;;  %v1328_v45 = vrot.slane %v1296_v33, %v3677_v12 }
 0x209   : > { %v1133_v42 = vpack.c.bf16 %v3688_v36, %v3688_v36  ;;  %2807 = vtanh.f32 %v1339_v38  ;;  %v1343_v46 = vadd.f32 %v1324_v41, %v1016_v21 }
 0x20a   : > { %2809 = vtanh.f32 %v1338_v39  ;;  %v1344_v48 = vadd.f32 %v1328_v45, %v1016_v21 }
 0x20b   : > { %2623 = vmatmul.mubr.bf16.vlgmr.msra.gmra.mrb[4].mxu0 %v1133_v42  ;;  %2811 = vtanh.f32 %v1340_v40 }
 0x20c   : > { %2628 = vmatprep.mubr.msk.bf16.mxu0 %vm3175_vm0, %v3174_v2  ;;  %2813 = vtanh.f32 %v1341_v43 }
 0x20d   : > { %2815 = vtanh.f32 %v1342_v44 }
 0x20e   : > { %2817 = vtanh.f32 %v1343_v46 }
 0x20f   : > { %2819 = vtanh.f32 %v1344_v48  ;;  %v3757_v48 = vsub.s32 1, %v3663_v62 }
 0x211   : > { %v2806_v49 = vpop.eup %2805 }
 0x212   : > { %v1359_v50 = vmul.f32 %v2806_v49, %v3699_v47  ;;  %v3760_v49 = vsub.s32 7, %v3663_v62 }
 0x213   : > { %v2808_v51 = vpop.eup %2807 }
 0x214   : > { %v2810_v52 = vpop.eup %2809  ;;  %1367 = vadd.xlane.f32.xlu0 %v1359_v50  ;;  %v1361_v53 = vmul.f32 %v2808_v51, %v3699_v47  ;;  %v3763_v50 = vsub.s32 2, %v3663_v62 }
 0x215   : > { %v2812_v2 = vpop.eup %2811  ;;  %v1360_v54 = vmul.f32 %v2810_v52, %v3699_v47 }
 0x216   : > { %1371 = vadd.xlane.f32.xlu1 %v1361_v53  ;;  %v2814_v55 = vpop.eup %2813  ;;  %v1362_v56 = vmul.f32 %v2812_v2, %v3699_v47 }
 0x217   : > { %v2816_v57 = vpop.eup %2815  ;;  %v1363_v58 = vmul.f32 %v2814_v55, %v3699_v47 }
 0x218   : > { %1369 = vadd.xlane.f32.xlu0 %v1360_v54  ;;  %v2818_v59 = vpop.eup %2817  ;;  %v1364_v61 = vmul.f32 %v2816_v57, %v3699_v47  ;;  %v3774_v54 = vsub.s32 3, %v3663_v62 }
 0x219   : > { %v2820_v63 = vpop.eup %2819  ;;  %v1365_v0 = vmul.f32 %v2818_v59, %v3699_v47 }
 0x21a   : > { %1373 = vadd.xlane.f32.xlu1 %v1362_v56  ;;  %v1366_v1 = vmul.f32 %v2820_v63, %v3699_v47 }
 0x21c   : > { %1375 = vadd.xlane.f32.xlu0 %v1363_v58 }
 0x21e   : > { %1377 = vadd.xlane.f32.xlu1 %v1364_v61  ;;  %v3782_v61 = vsub.s32 4, %v3663_v62 }
 0x220   : > { %1379 = vadd.xlane.f32.xlu0 %v1365_v0 }
 0x222   : > { %1381 = vadd.xlane.f32.xlu1 %v1366_v1 }
 0x236   : > { %1389 = vperm.xlu0 %2737, %v3709_v3  }
 0x2a1   : > { %v1368_v4 = vpop.xlane.xlu0 %1367 }
 0x2a3   : > { %v1372_v7 = vpop.xlane.xlu1 %1371 }
 0x2a5   : > { %v1370_v5 = vpop.xlane.xlu0 %1369 }
 0x2a7   : > { %v1374_v9 = vpop.xlane.xlu1 %1373 }
 0x2a9   : > { %v1376_v8 = vpop.xlane.xlu0 %1375 }
 0x2ab   : > { %v1378_v13 = vpop.xlane.xlu1 %1377 }
 0x2ad   : > { %v1380_v11 = vpop.xlane.xlu0 %1379 }
 0x2af   : > { %v1382_v25 = vpop.xlane.xlu1 %1381 }
 0x2b5   : > { %v1390_v15 = vpop.permute.xlu0 %1389 }
 0x2b6   : > { %v3716_v16 = vadd.f32 %v1390_v15, %v1368_v4  ;;  %v3718_v17 = vadd.f32 %v1390_v15, %v1370_v5  ;;  %v3720_v18 = vadd.f32 %v1390_v15, %v1372_v7  ;;  %v3722_v19 = vadd.f32 %v1390_v15, %v1374_v9 }
 0x2b7   : > { %v3724_v20 = vadd.f32 %v1390_v15, %v1376_v8  ;;  %v3726_v21 = vadd.f32 %v1390_v15, %v1378_v13  ;;  %v3734_v26 = vadd.f32 %v1390_v15, %v1380_v11  ;;  %v3736_v27 = vadd.f32 %v1390_v15, %v1382_v25 }
 0x2b8   : > { %v1420_v60 = vrot.slane %v3716_v16, %v3714_v14  ;;  %v1424_v22 = vrot.slane %v3718_v17, %v3714_v14  ;;  %v1428_v23 = vrot.slane %v3720_v18, %v3714_v14  ;;  %v1432_v28 = vrot.slane %v3722_v19, %v3714_v14 }
 0x2b9   : > { %v1436_v30 = vrot.slane %v3724_v20, %v3714_v14  ;;  %v1440_v32 = vrot.slane %v3726_v21, %v3714_v14  ;;  %v1444_v34 = vrot.slane %v3734_v26, %v3714_v14  ;;  %v1448_v38 = vrot.slane %v3736_v27, %v3714_v14 }
 0x2ba   : > { %v1450_v29 = vsel %vm1449_vm2, %v1424_v22, %v1420_v60  ;;  %v3788_v5 = vsub.s32 5, %v3663_v62 }
 0x2bb   : > { %v1452_v31 = vsel %vm1451_vm3, %v1428_v23, %v1450_v29 }
 0x2bc   : > { %v1454_v33 = vsel %vm1453_vm4, %v1432_v28, %v1452_v31 }
 0x2bd   : > { %v1456_v35 = vsel %vm1455_vm5, %v1436_v30, %v1454_v33 }
 0x2be   : > { %v1458_v39 = vsel %vm1457_vm6, %v1440_v32, %v1456_v35 }
 0x2bf   : > { %v1460_v40 = vsel %vm1459_vm7, %v1444_v34, %v1458_v39  ;;  %v2500_v39 = vld [vmem:[%s4135_s18] ss:$0 sm:$0xff] }
 0x2c0   : > { %v1462_v41 = vsel %vm1461_vm8, %v1448_v38, %v1460_v40 }
 0x2c1   : > { %v1465_v42 = vsel %vm1464_vm9, %v1462_v41, -inf }
 0x2c2   : > { %1466 = vmax.xlane.f32.xlu1 %v1465_v42 }
 0x2de   : > { %v1239_v43 = vpop.f32.mrb[4].mxu0 }
 0x2df   : > { %v2624_v44 = vpop.f32.mrb[5].mxu0  ;;  %v1240_v40 = vadd.f32 %v2500_v39, %v1239_v43 }
 0x2e0   : > { %v1242_v45 = vpop.f32.mrb[6].mxu0 }
 0x2e1   : > { %v2625_v46 = vpop.f32.mrb[7].mxu0  ;;  %v1400_v41 = vadd.f32 %v1240_v40, %v3671_v6 }
 0x34f   : > { %v3765_v51 = vpop.xlane.xlu1 %1466 }
 0x350   : > { %v1472_v52 = vrot.slane %v3765_v51, %v3677_v12  ;;  %v1476_v53 = vrot.slane %v3765_v51, %v3757_v48  ;;  %v1500_v2 = vrot.slane %v3765_v51, %v3760_v49  ;;  %v1480_v55 = vrot.slane %v3765_v51, %v3763_v50 }
 0x351   : > { %v1484_v0 = vrot.slane %v3765_v51, %v3774_v54  ;;  %v1488_v7 = vrot.slane %v3765_v51, %v3782_v61  ;;  %v1492_v11 = vrot.slane %v3765_v51, %v3788_v5  ;;  %v1496_v23 = vrot.slane %v3765_v51, %v3794_v10 }
 0x352   : > { %v1509_v56 = vsub.f32 %v3716_v16, %v1472_v52  ;;  %v1510_v57 = vsub.f32 %v3718_v17, %v1476_v53  ;;  %v1516_v58 = vsub.f32 %v3736_v27, %v1500_v2  ;;  %v1511_v4 = vsub.f32 %v3720_v18, %v1480_v55 }
 0x353   : > { %v1512_v9 = vsub.f32 %v3722_v19, %v1484_v0  ;;  %v1513_v15 = vsub.f32 %v3724_v20, %v1488_v7  ;;  %v1514_v25 = vsub.f32 %v3726_v21, %v1492_v11  ;;  %v1515_v30 = vsub.f32 %v3734_v26, %v1496_v23 }
 0x354   : > { %v1517_v59 = vmul.f32 1.442695, %v1509_v56  ;;  %v1531_v63 = vmul.f32 1.442695, %v1516_v58  ;;  %v1519_v1 = vmul.f32 1.442695, %v1510_v57 }
 0x355   : > { %v1521_v8 = vmul.f32 1.442695, %v1511_v4  ;;  %v1523_v13 = vmul.f32 1.442695, %v1512_v9  ;;  %v1525_v62 = vmul.f32 1.442695, %v1513_v15 }
 0x356   : > { %2821 = vpow2.f32 %v1517_v59  ;;  %v1527_v29 = vmul.f32 1.442695, %v1514_v25  ;;  %v1529_v32 = vmul.f32 1.442695, %v1515_v30 }
 0x357   : > { %2823 = vpow2.f32 %v1531_v63 }
 0x358   : > { %2825 = vpow2.f32 %v1519_v1 }
 0x359   : > { %2827 = vpow2.f32 %v1521_v8 }
 0x35a   : > { %2829 = vpow2.f32 %v1523_v13 }
 0x35b   : > { %2831 = vpow2.f32 %v1525_v62 }
 0x35c   : > { %2833 = vpow2.f32 %v1527_v29 }
 0x35d   : > { %2835 = vpow2.f32 %v1529_v32 }
 0x35e   : > { %2837 = vtanh.f32 %v1400_v41 }
 0x360   : > { %v3799_v60 = vpop.eup %2821 }
 0x361   : > { %v3801_v22 = vpop.eup %2823  ;;  %1542 = vperm.xlu1 %2738, %v3799_v60  }
 0x362   : > { %1563 = vperm.xlu0 %2737, %v3801_v22   ;;  %v3808_v28 = vpop.eup %2825 }
 0x363   : > { %v3812_v31 = vpop.eup %2827 }
 0x364   : > { %v3815_v33 = vpop.eup %2829 }
 0x365   : > { %1545 = vperm.xlu1 %2738, %v3808_v28   ;;  %v3818_v34 = vpop.eup %2831 }
 0x366   : > { %v3821_v35 = vpop.eup %2833 }
 0x367   : > { %v3824_v38 = vpop.eup %2835 }
 0x368   : > { %v2838_v42 = vpop.eup %2837 }
 0x369   : > { %1548 = vperm.xlu1 %2738, %v3812_v31   ;;  %v1402_v44 = vmul.f32 %v2838_v42, %v3699_v47 }
 0x36d   : > { %1551 = vperm.xlu1 %2738, %v3815_v33  }
 0x371   : > { %1554 = vperm.xlu1 %2738, %v3818_v34  }
 0x375   : > { %1557 = vperm.xlu1 %2738, %v3821_v35  }
 0x379   : > { %1560 = vperm.xlu1 %2738, %v3824_v38  }
 0x39d   : > { %1403 = vadd.xlane.f32.xlu1 %v1402_v44 }
 0x3e0   : > { %v1543_v45 = vpop.permute.xlu1 %1542 }
 0x3e1   : > { %v1568_v57 = vrot.slane %v1543_v45, %v3714_v14  ;;  %v1564_v63 = vpop.permute.xlu0 %1563 }
 0x3e2   : > { %v1596_v9 = vrot.slane %v1564_v63, %v3714_v14 }
 0x3e4   : > { %v1546_v46 = vpop.permute.xlu1 %1545 }
 0x3e5   : > { %v1572_v55 = vrot.slane %v1546_v46, %v3714_v14 }
 0x3e7   : > { %v1597_v59 = vsel %vm1449_vm2, %v1572_v55, %v1568_v57 }
 0x3e8   : > { %v1549_v52 = vpop.permute.xlu1 %1548 }
 0x3e9   : > { %v1576_v56 = vrot.slane %v1549_v52, %v3714_v14 }
 0x3eb   : > { %v1598_v0 = vsel %vm1451_vm3, %v1576_v56, %v1597_v59 }
 0x3ec   : > { %v1552_v53 = vpop.permute.xlu1 %1551 }
 0x3ed   : > { %v1580_v43 = vrot.slane %v1552_v53, %v3714_v14 }
 0x3ef   : > { %v1599_v1 = vsel %vm1453_vm4, %v1580_v43, %v1598_v0 }
 0x3f0   : > { %v1555_v2 = vpop.permute.xlu1 %1554 }
 0x3f1   : > { %v1584_v6 = vrot.slane %v1555_v2, %v3714_v14 }
 0x3f3   : > { %v1600_v7 = vsel %vm1455_vm5, %v1584_v6, %v1599_v1 }
 0x3f4   : > { %v1558_v58 = vpop.permute.xlu1 %1557 }
 0x3f5   : > { %v1588_v47 = vrot.slane %v1558_v58, %v3714_v14 }
 0x3f7   : > { %v1601_v11 = vsel %vm1457_vm6, %v1588_v47, %v1600_v7 }
 0x3f8   : > { %v1561_v4 = vpop.permute.xlu1 %1560 }
 0x3f9   : > { %v1592_v8 = vrot.slane %v1561_v4, %v3714_v14 }
 0x3fb   : > { %v1602_v13 = vsel %vm1459_vm7, %v1592_v8, %v1601_v11 }
 0x3fc   : > { %v1603_v15 = vsel %vm1461_vm8, %v1596_v9, %v1602_v13 }
 0x3fd   : > { %v1605_v23 = vsel %vm1464_vm9, %v1603_v15, 0.0 }
 0x3fe   : > { %1606 = vadd.xlane.f32.xlu0 %v1605_v23 }
 0x42a   : > { %v1404_v62 = vpop.xlane.xlu1 %1403 }
 0x42b   : > { %v3849_v25 = vadd.f32 %v3709_v3, %v1404_v62 }
 0x42d   : > { %v3853_v29 = vmax.f32 %v3765_v51, %v3849_v25 }
 0x42f   : > { %v1666_v30 = vsub.f32 %v3849_v25, %v3853_v29  ;;  %1671 = vperm.xlu0 %2737, %v3853_v29   ;;  %v2795_v25 = vld [vmem:[#allocation12 + $0x64] ss:$8 sps:$4 sm:$0xff]   ;;  %v2793_v29 = vld [vmem:[#allocation12 + $0x60] ss:$8 sps:$4 sm:$0xff]  }
 0x48b   : > { %v1607_v32 = vpop.xlane.xlu0 %1606 }
 0x48c   : > { %v1612_v39 = vrot.slane %v1607_v32, %v3677_v12  ;;  %v1620_v40 = vrot.slane %v1607_v32, %v3763_v50  ;;  %v1616_v41 = vrot.slane %v1607_v32, %v3757_v48  ;;  %v1628_v42 = vrot.slane %v1607_v32, %v3782_v61 }
 0x48d   : > { %v1624_v3 = vrot.slane %v1607_v32, %v3774_v54  ;;  %v1636_v51 = vrot.slane %v1607_v32, %v3794_v10  ;;  %v1632_v44 = vrot.slane %v1607_v32, %v3788_v5  ;;  %v1640_v45 = vrot.slane %v1607_v32, %v3760_v49 }
 0x48e   : > { %2839 = vrcp.f32 %v1612_v39 }
 0x48f   : > { %2841 = vrcp.f32 %v1620_v40 }
 0x490   : > { %2843 = vrcp.f32 %v1616_v41 }
 0x491   : > { %2845 = vrcp.f32 %v1628_v42 }
 0x492   : > { %2847 = vrcp.f32 %v1624_v3 }
 0x493   : > { %2849 = vrcp.f32 %v1636_v51 }
 0x494   : > { %2851 = vrcp.f32 %v1632_v44 }
 0x495   : > { %2853 = vrcp.f32 %v1640_v45 }
 0x498   : > { %v2840_v46 = vpop.eup %2839 }
 0x499   : > { %v2842_v52 = vpop.eup %2841  ;;  %v3867_v53 = vmul.f32 %v2840_v46, %v3799_v60 }
 0x49a   : > { %v2844_v2 = vpop.eup %2843  ;;  %v3870_v55 = vmul.f32 %v2842_v52, %v3812_v31 }
 0x49b   : > { %v2846_v56 = vpop.eup %2845  ;;  %v1815_v57 = vpack.c.bf16 %v3867_v53, %v3867_v53  ;;  %v3875_v43 = vmul.f32 %v2844_v2, %v3808_v28 }
 0x49c   : > { %v2848_v58 = vpop.eup %2847  ;;  %v1817_v6 = vpack.c.bf16 %v3870_v55, %v3870_v55  ;;  %v3880_v59 = vmul.f32 %v2846_v56, %v3818_v34 }
 0x49d   : > { %v2850_v60 = vpop.eup %2849  ;;  %v1831_v47 = vunpack.c.l.b16 %v1815_v57  ;;  %v1816_v31 = vpack.c.bf16 %v3875_v43, %v3875_v43  ;;  %v3885_v63 = vmul.f32 %v2848_v58, %v3815_v33 }
 0x49e   : > { %v2852_v0 = vpop.eup %2851  ;;  %v1833_v1 = vunpack.c.l.b16 %v1817_v6  ;;  %v1819_v28 = vpack.c.bf16 %v3880_v59, %v3880_v59  ;;  %v3890_v4 = vmul.f32 %v2850_v60, %v3824_v38 }
 0x49f   : > { %1840 = vperm.xlu1 %2738, %v1831_v47   ;;  %v1832_v34 = vunpack.c.l.b16 %v1816_v31  ;;  %v1818_v7 = vpack.c.bf16 %v3885_v63, %v3885_v63  ;;  %v3895_v8 = vmul.f32 %v2852_v0, %v3821_v35  ;;  %v2854_v9 = vpop.eup %2853 }
 0x4a0   : > { %1846 = vperm.xlu0 %2737, %v1833_v1   ;;  %v1835_v33 = vunpack.c.l.b16 %v1819_v28  ;;  %v1821_v11 = vpack.c.bf16 %v3890_v4, %v3890_v4  ;;  %v3902_v15 = vmul.f32 %v2854_v9, %v3801_v22 }
 0x4a1   : > { %v1834_v13 = vunpack.c.l.b16 %v1818_v7  ;;  %v1820_v38 = vpack.c.bf16 %v3895_v8, %v3895_v8 }
 0x4a2   : > { %v1837_v23 = vunpack.c.l.b16 %v1821_v11  ;;  %v1822_v35 = vpack.c.bf16 %v3902_v15, %v3902_v15 }
 0x4a3   : > { %1843 = vperm.xlu1 %2738, %v1832_v34   ;;  %v1836_v62 = vunpack.c.l.b16 %v1820_v38 }
 0x4a4   : > { %1852 = vperm.xlu0 %2737, %v1835_v33   ;;  %v1838_v32 = vunpack.c.l.b16 %v1822_v35 }
 0x4a7   : > { %1849 = vperm.xlu1 %2738, %v1834_v13  }
 0x4a8   : > { %1858 = vperm.xlu0 %2737, %v1837_v23  }
 0x4ab   : > { %1855 = vperm.xlu1 %2738, %v1836_v62  }
 0x4ae   : > { %v1672_v39 = vpop.permute.xlu0 %1671 }
 0x4af   : > { %v1676_v40 = vrot.slane %v1672_v39, %v3677_v12  ;;  %v1680_v41 = vrot.slane %v1672_v39, %v3757_v48  ;;  %v1684_v42 = vrot.slane %v1672_v39, %v3763_v50  ;;  %v1688_v3 = vrot.slane %v1672_v39, %v3774_v54  ;;  %1861 = vperm.xlu1 %2738, %v1838_v32  }
 0x4b0   : > { %v1692_v22 = vrot.slane %v1672_v39, %v3782_v61  ;;  %v1696_v46 = vrot.slane %v1672_v39, %v3788_v5  ;;  %v1700_v57 = vrot.slane %v1672_v39, %v3794_v10  ;;  %v1704_v50 = vrot.slane %v1672_v39, %v3760_v49 }
 0x4b1   : > { %v1713_v51 = vsub.f32 %v3716_v16, %v1676_v40  ;;  %v1714_v44 = vsub.f32 %v3718_v17, %v1680_v41  ;;  %v1715_v45 = vsub.f32 %v3720_v18, %v1684_v42  ;;  %v1716_v52 = vsub.f32 %v3722_v19, %v1688_v3 }
 0x4b2   : > { %v1717_v54 = vsub.f32 %v3724_v20, %v1692_v22  ;;  %v1718_v16 = vsub.f32 %v3726_v21, %v1696_v46  ;;  %v1908_v18 = vsel %vm1906_vm10, %v3619_v24, 0  ;;  %v1719_v19 = vsub.f32 %v3734_v26, %v1700_v57 }
 0x4b3   : > { %v1721_v2 = vmul.f32 1.442695, %v1713_v51  ;;  %v1723_v56 = vmul.f32 1.442695, %v1714_v44  ;;  %v1725_v61 = vmul.f32 1.442695, %v1715_v45  ;;  %2627 = vmatpush3.bf16.msra.mxu0 %v1908_v18  ;;  %v1720_v10 = vsub.f32 %v3736_v27, %v1704_v50 }
 0x4b4   : > { %v1727_v17 = vmul.f32 1.442695, %v1716_v52  ;;  %v1729_v5 = vmul.f32 1.442695, %v1717_v54  ;;  %v1731_v49 = vmul.f32 1.442695, %v1718_v16 }
 0x4b5   : > { %2855 = vpow2.f32 %v1721_v2  ;;  %v1733_v20 = vmul.f32 1.442695, %v1719_v19  ;;  %v1735_v58 = vmul.f32 1.442695, %v1720_v10 }
 0x4b6   : > { %2857 = vpow2.f32 %v1723_v56 }
 0x4b7   : > { %2859 = vpow2.f32 %v1725_v61 }
 0x4b8   : > { %2861 = vpow2.f32 %v1727_v17 }
 0x4b9   : > { %2863 = vpow2.f32 %v1729_v5 }
 0x4ba   : > { %2865 = vpow2.f32 %v1731_v49 }
 0x4bb   : > { %2867 = vpow2.f32 %v1733_v20 }
 0x4bc   : > { %2869 = vpow2.f32 %v1735_v58 }
 0x4bf   : > { %v2856_v6 = vpop.eup %2855 }
 0x4c0   : > { %v2858_v60 = vpop.eup %2857  ;;  %1746 = vperm.xlu0 %2737, %v2856_v6  }
 0x4c1   : > { %1749 = vperm.xlu1 %2738, %v2858_v60   ;;  %v2860_v24 = vpop.eup %2859 }
 0x4c2   : > { %v2862_v21 = vpop.eup %2861 }
 0x4c3   : > { %v2864_v26 = vpop.eup %2863 }
 0x4c4   : > { %1752 = vperm.xlu0 %2737, %v2860_v24   ;;  %v2866_v47 = vpop.eup %2865 }
 0x4c5   : > { %1755 = vperm.xlu1 %2738, %v2862_v21   ;;  %v2868_v27 = vpop.eup %2867 }
 0x4c6   : > { %v2870_v31 = vpop.eup %2869 }
 0x4c8   : > { %1758 = vperm.xlu0 %2737, %v2864_v26  }
 0x4c9   : > { %1761 = vperm.xlu1 %2738, %v2866_v47  }
 0x4cc   : > { %1764 = vperm.xlu0 %2737, %v2868_v27  }
 0x4cd   : > { %1767 = vperm.xlu1 %2738, %v2870_v31  }
 0x51e   : > { %v1841_v0 = vpop.permute.xlu1 %1840 }
 0x51f   : > { %v1847_v1 = vpop.permute.xlu0 %1846  ;;  %v1866_v34 = vrot.slane %v1841_v0, %v3714_v14  ;;  %v2775_v0 = vld [vmem:[#allocation12] ss:$8 sps:$4 sm:$0xff]  }
 0x520   : > { %v1874_v11 = vrot.slane %v1847_v1, %v3714_v14  ;;  %v2777_v1 = vld [vmem:[#allocation12 + $0x4] ss:$8 sps:$4 sm:$0xff]  }
 0x521   : > { %2074 = vmatprep.subr.bf16.mxu1 %v2777_v1 }
 0x522   : > { %v1844_v28 = vpop.permute.xlu1 %1843  ;;  %2075 = vmatpush1.bf16.msra.mxu1 %v2775_v0 }
 0x523   : > { %v1870_v7 = vrot.slane %v1844_v28, %v3714_v14  ;;  %v1853_v9 = vpop.permute.xlu0 %1852  ;;  %v2780_v28 = vld [vmem:[#allocation12 + $0x14] ss:$8 sps:$4 sm:$0xff]  }
 0x524   : > { %v1882_v35 = vrot.slane %v1853_v9, %v3714_v14  ;;  %2076 = vmatprep.subr.bf16.mxu1 %v2780_v28  ;;  %v2781_v9 = vld [vmem:[#allocation12 + $0x20] ss:$8 sps:$4 sm:$0xff]  }
 0x525   : > { %v1895_v33 = vsel %vm1449_vm2, %v1870_v7, %v1866_v34  ;;  %v2778_v34 = vld [vmem:[#allocation12 + $0x10] ss:$8 sps:$4 sm:$0xff]   ;;  %v2783_v7 = vld [vmem:[#allocation12 + $0x24] ss:$8 sps:$4 sm:$0xff]  }
 0x526   : > { %v1850_v13 = vpop.permute.xlu1 %1849  ;;  %v1896_v23 = vsel %vm1451_vm3, %v1874_v11, %v1895_v33  ;;  %2077 = vmatpush1.bf16.msra.mxu1 %v2778_v34  ;;  %v2786_v33 = vld [vmem:[#allocation12 + $0x34] ss:$8 sps:$4 sm:$0xff]   ;;  %v2784_v11 = vld [vmem:[#allocation12 + $0x30] ss:$8 sps:$4 sm:$0xff]  }
 0x527   : > { %v1878_v38 = vrot.slane %v1850_v13, %v3714_v14  ;;  %v1859_v39 = vpop.permute.xlu0 %1858  ;;  %2078 = vmatprep.subr.bf16.mxu1 %v2783_v7  ;;  %v2789_v13 = vld [vmem:[#allocation12 + $0x44] ss:$8 sps:$4 sm:$0xff]  }
 0x528   : > { %v1890_v3 = vrot.slane %v1859_v39, %v3714_v14 }
 0x529   : > { %v1897_v62 = vsel %vm1453_vm4, %v1878_v38, %v1896_v23  ;;  %v2787_v38 = vld [vmem:[#allocation12 + $0x40] ss:$8 sps:$4 sm:$0xff]  }
 0x52a   : > { %v1856_v32 = vpop.permute.xlu1 %1855  ;;  %v1898_v41 = vsel %vm1455_vm5, %v1882_v35, %v1897_v62  ;;  %2079 = vmatpush1.bf16.msra.mxu1 %v2781_v9 }
 0x52b   : > { %v1886_v40 = vrot.slane %v1856_v32, %v3714_v14  ;;  %2080 = vmatprep.subr.bf16.mxu1 %v2786_v33 }
 0x52d   : > { %v1899_v42 = vsel %vm1457_vm6, %v1886_v40, %v1898_v41  ;;  %v2790_v40 = vld [vmem:[#allocation12 + $0x50] ss:$8 sps:$4 sm:$0xff]   ;;  %v2792_v41 = vld [vmem:[#allocation12 + $0x54] ss:$8 sps:$4 sm:$0xff]  }
 0x52e   : > { %v1862_v22 = vpop.permute.xlu1 %1861  ;;  %v1900_v44 = vsel %vm1459_vm7, %v1890_v3, %v1899_v42  ;;  %2081 = vmatpush1.bf16.msra.mxu1 %v2784_v11  ;;  %v2796_v3 = vld [vmem:[#allocation12 + $0x70] ss:$8 sps:$4 sm:$0xff]  }
 0x52f   : > { %v1894_v51 = vrot.slane %v1862_v22, %v3714_v14  ;;  %2082 = vmatprep.subr.bf16.mxu1 %v2789_v13 }
 0x531   : > { %v1901_v45 = vsel %vm1461_vm8, %v1894_v51, %v1900_v44 }
 0x532   : > { %v1902_v46 = vpack.c.b16 %v1901_v45, %v1901_v45  ;;  %2083 = vmatpush1.bf16.msra.mxu1 %v2787_v38 }
 0x533   : > { %2084 = vmatprep.subr.bf16.mxu1 %v2792_v41 }
 0x534   : > { %2629 = vmatmul.mubr.msk.bf16.vlgmr.msra.gmra.mrb[8].mxu0 %vm1464_vm9, %v1902_v46 }
 0x536   : > { %2085 = vmatpush1.bf16.msra.mxu1 %v2790_v40 }
 0x537   : > { %2086 = vmatprep.subr.bf16.mxu1 %v2795_v25 }
 0x53a   : > { %2087 = vmatpush1.bf16.msra.mxu1 %v2793_v29 }
 0x53f   : > { %v1747_v52 = vpop.permute.xlu0 %1746 }
 0x540   : > { %v1750_v2 = vpop.permute.xlu1 %1749  ;;  %v1772_v56 = vrot.slane %v1747_v52, %v3714_v14 }
 0x541   : > { %v1776_v57 = vrot.slane %v1750_v2, %v3714_v14 }
 0x543   : > { %v1753_v50 = vpop.permute.xlu0 %1752  ;;  %v1801_v16 = vsel %vm1449_vm2, %v1776_v57, %v1772_v56 }
 0x544   : > { %v1780_v54 = vrot.slane %v1753_v50, %v3714_v14  ;;  %v1756_v61 = vpop.permute.xlu1 %1755 }
 0x545   : > { %v1784_v17 = vrot.slane %v1756_v61, %v3714_v14 }
 0x546   : > { %v1802_v18 = vsel %vm1451_vm3, %v1780_v54, %v1801_v16 }
 0x547   : > { %v1759_v19 = vpop.permute.xlu0 %1758  ;;  %v1803_v49 = vsel %vm1453_vm4, %v1784_v17, %v1802_v18 }
 0x548   : > { %v1788_v5 = vrot.slane %v1759_v19, %v3714_v14  ;;  %v1762_v10 = vpop.permute.xlu1 %1761 }
 0x549   : > { %v1792_v20 = vrot.slane %v1762_v10, %v3714_v14 }
 0x54a   : > { %v1804_v58 = vsel %vm1455_vm5, %v1788_v5, %v1803_v49 }
 0x54b   : > { %v1765_v6 = vpop.permute.xlu0 %1764  ;;  %v1805_v21 = vsel %vm1457_vm6, %v1792_v20, %v1804_v58 }
 0x54c   : > { %v1796_v60 = vrot.slane %v1765_v6, %v3714_v14  ;;  %v1768_v24 = vpop.permute.xlu1 %1767 }
 0x54d   : > { %v1800_v26 = vrot.slane %v1768_v24, %v3714_v14 }
 0x54e   : > { %v1806_v47 = vsel %vm1459_vm7, %v1796_v60, %v1805_v21 }
 0x54f   : > { %v1807_v27 = vsel %vm1461_vm8, %v1800_v26, %v1806_v47 }
 0x550   : > { %v1809_v31 = vsel %vm1464_vm9, %v1807_v27, 0.0 }
 0x551   : > { %1810 = vadd.xlane.f32.xlu0 %v1809_v31 }
 0x567   : > { %2144 = vperm.xlu0 %2737, %v3890_v4   ;;  %v1667_v4 = vmul.f32 1.442695, %v1666_v30  ;;  %v2798_v30 = vld [vmem:[#allocation12 + $0x74] ss:$8 sps:$4 sm:$0xff]  }
 0x568   : > { %2088 = vmatprep.subr.bf16.mxu1 %v2798_v30 }
 0x569   : > { %2871 = vpow2.f32 %v1667_v4  ;;  %2089 = vmatpush1.bf16.msra.mxu1 %v2796_v3 }
 0x573   : > { %v2872_v23 = vpop.eup %2871 }
 0x5de   : > { %v1811_v62 = vpop.xlane.xlu0 %1810 }
 0x5df   : > { %v1812_v35 = vadd.f32 %v2872_v23, %v1811_v62 }
 0x5e1   : > { %2873 = vrcp.f32 %v1812_v35 }
 0x5e6   : > { %v2145_v19 = vpop.permute.xlu0 %2144 }
 0x5e7   : > { %v2176_v58 = vrot.slane %v2145_v19, %v3714_v14 }
 0x5eb   : > { %v2874_v32 = vpop.eup %2873 }
 0x5ec   : > { %v1814_v39 = vmul.f32 %v2874_v32, %v2872_v23 }
 0x5ee   : > { %1952 = vperm.xlu1 %2738, %v1814_v39   ;;  %2191 = vst.msk [vmem:[%s745_s17] sm:$0xff] %vm2190_vm11, %v1814_v39  ;;  %v1956_v42 = vsub.f32 1.0, %v1814_v39 }
 0x5f2   : > { %1959 = vperm.xlu1 %2738, %v1956_v42  }
 0x5f6   : > { %2126 = vperm.xlu1 %2738, %v3867_v53  }
 0x5fa   : > { %2129 = vperm.xlu1 %2738, %v3875_v43  }
 0x5fe   : > { %2132 = vperm.xlu1 %2738, %v3870_v55  }
 0x602   : > { %2135 = vperm.xlu1 %2738, %v3885_v63  }
 0x606   : > { %2138 = vperm.xlu1 %2738, %v3880_v59  }
 0x607   : > { %v1944_v22 = vpop.f32.mrb[8].mxu0 }
 0x608   : > { %v2630_v51 = vpop.f32.mrb[9].mxu0 }
 0x609   : > { %v1947_v44 = vpop.f32.mrb[10].mxu0 }
 0x60a   : > { %2141 = vperm.xlu1 %2738, %v3895_v8   ;;  %v2631_v53 = vpop.f32.mrb[11].mxu0 }
 0x60e   : > { %2147 = vperm.xlu1 %2738, %v3902_v15  }
 0x66d   : > { %v1953_v45 = vpop.permute.xlu1 %1952 }
 0x66e   : > { %v1955_v46 = vmul.f32 %v1953_v45, %v3688_v36 }
 0x671   : > { %v1960_v43 = vpop.permute.xlu1 %1959 }
 0x672   : > { %v1962_v52 = vmul.f32 %v1960_v43, %v1944_v22 }
 0x674   : > { %v1963_v2 = vadd.f32 %v1962_v52, %v1955_v46 }
 0x675   : > { %v2127_v55 = vpop.permute.xlu1 %2126 }
 0x676   : > { %v1964_v56 = vadd.f32 %v1963_v2, %v3645_v37  ;;  %v2152_v15 = vrot.slane %v2127_v55, %v3714_v14 }
 0x678   : > { %v1965_v63 = vpack.c.bf16 %v1964_v56, %v1964_v56 }
 0x679   : > { %v2130_v57 = vpop.permute.xlu1 %2129 }
 0x67a   : > { %2107 = vmatmul.mubr.bf16.vlgmr.msra.gmra.mrb[8].mxu1 %v1965_v63  ;;  %v2156_v54 = vrot.slane %v2130_v57, %v3714_v14 }
 0x67c   : > { %v2181_v37 = vsel %vm1449_vm2, %v2156_v54, %v2152_v15 }
 0x67d   : > { %v2133_v59 = vpop.permute.xlu1 %2132 }
 0x67e   : > { %v2160_v8 = vrot.slane %v2133_v59, %v3714_v14 }
 0x680   : > { %v2182_v17 = vsel %vm1451_vm3, %v2160_v8, %v2181_v37 }
 0x681   : > { %v2136_v50 = vpop.permute.xlu1 %2135 }
 0x682   : > { %v2164_v36 = vrot.slane %v2136_v50, %v3714_v14 }
 0x684   : > { %v2183_v5 = vsel %vm1453_vm4, %v2164_v36, %v2182_v17 }
 0x685   : > { %v2139_v61 = vpop.permute.xlu1 %2138 }
 0x686   : > { %v2168_v16 = vrot.slane %v2139_v61, %v3714_v14 }
 0x688   : > { %v2184_v49 = vsel %vm1455_vm5, %v2168_v16, %v2183_v5 }
 0x689   : > { %v2142_v18 = vpop.permute.xlu1 %2141 }
 0x68a   : > { %v2172_v10 = vrot.slane %v2142_v18, %v3714_v14 }
 0x68c   : > { %v2185_v20 = vsel %vm1457_vm6, %v2172_v10, %v2184_v49 }
 0x68d   : > { %v2148_v6 = vpop.permute.xlu1 %2147  ;;  %v2186_v24 = vsel %vm1459_vm7, %v2176_v58, %v2185_v20 }
 0x68e   : > { %v2180_v60 = vrot.slane %v2148_v6, %v3714_v14 }
 0x690   : > { %v2187_v21 = vsel %vm1461_vm8, %v2180_v60, %v2186_v24 }
 0x691   : > { %2189 = vst.msk [vmem:[%s726_s2] sm:$0xff] %vm1464_vm9, %v2187_v21 }
 0x692   : > { %3060 = shalt.err (!%p3057_p11)
}
 0x693   : > { %s3061_s18 = scalar_lea.hbm %s3994_s13, 128  ;;  %s3065_s27 = scalar_lea.hbm %s4137_s8, 256 }
 0x694   : > { %p3062_p1 = scmp.ne.s32.totalorder %s3994_s13, %s3061_s18  ;;  %p3066_p3 = scmp.lt.u32.totalorder %s3994_s13, %s4137_s8 }
 0x695   : > { %p3067_p13 = scmp.lt.u32.totalorder %s3065_s27, %s3061_s18  ;;  %p3069_p2 = scmp.lt.u32.totalorder %s3061_s18, %s3994_s13 }
 0x696   : > { %p3063_p9 = pnand %p3062_p1, %p4138_p4 }
 0x697   : > { %p3068_p0 = por %p3067_p13, %p3066_p3 }
 0x698   : > { %p3064_p12 = pneg %p3063_p9 }
 0x699   : > { %p3070_p10 = por %p3069_p2, %p3068_p0 }
 0x69b   : > { %p3071_p5 = pnand %p3070_p10, %p3064_p12 }
 0x69d   : > { %3074 = shalt.err (!%p3071_p5)
}
 0x69e   : > { %2653 = dma.vmem_to_hbm [thread:$0]  (%p4138_p4), %s2230_s28, 128, %s3994_s13, %s2198_s25  }
 0x69f   : > { %s2461_s26 = sshll.u32 %s3533_s22, 4  ;;  %s4139_s0 = sld [smem:[#allocation35_spill]] }
 0x6a0   : > { %s2536_s10 = sshll.u32 %s3298_s20, 8  ;;  %s719_s1 = scalar_lea.vmem [#allocation14], %s2461_s26 }
 0x6a1   : > { %s2216_s14 = sshll.u32 %s719_s1, 4  ;;  %s4140_s25 = sld [smem:[#allocation36_spill]]  ;;  %s4026_s14 = int_to_ptr.vmem [resolvable:$true] %s2216_s14 }
 0x6a2   : > { %s2193_s20 = scalar_lea.sflag [#allocation5], %s3533_s22  ;;  %s3075_s11 = scalar_lea.vmem %s4026_s14, 256 }
 0x6a3   : > { %p3076_p7 = scmp.ne.s32.totalorder %s4026_s14, %s3075_s11  ;;  %s3178_s21 = smov [#allocation14]  }
 0x6a4   : > { %s3079_s27 = sshll.u32 %s3178_s21, 4  ;;  %s3080_s27 = int_to_ptr.vmem [resolvable:$false] %s3079_s27 }
 0x6a5   : > { %v1982_v14 = vld [vmem:[%s4139_s0] sm:$0x3]  ;;  %p3077_p8 = pnand %p3076_p7, %p4138_p4  ;;  %s3081_s17 = scalar_lea.vmem %s3080_s27, 512 }
 0x6a6   : > { %v1987_v26 = vrot.slane %v1982_v14, %v3677_v12  ;;  %v1991_v47 = vrot.slane %v1982_v14, %v3757_v48  ;;  %p3082_p11 = scmp.lt.s32.totalorder %s4026_s14, %s3080_s27  ;;  %p3083_p1 = scmp.lt.s32.totalorder %s3081_s17, %s3075_s11 }
 0x6a7   : > { %s4024_s18 = scalar_lea.hbm %s4140_s25, %s2536_s10  ;;  %p3078_p6 = pneg %p3077_p8 }
 0x6a8   : > { %p3084_p9 = por %p3083_p1, %p3082_p11 }
 0x6aa   : > { %p3085_p12 = pnand %p3084_p9, %p3078_p6 }
 0x74d   : > { %v2108_v27 = vpop.f32.mrb[8].mxu1 }
 0x74e   : > { %v2109_v31 = vadd.f32 %v2108_v27, %v1987_v26  ;;  %v2110_v0 = vpop.f32.mrb[9].mxu1 }
 0x74f   : > { %v2111_v1 = vadd.f32 %v2110_v0, %v1991_v47  ;;  %v2112_v28 = vpop.f32.mrb[10].mxu1 }
 0x750   : > { %2115 = vst [vmem:[%s719_s1] sm:$0xff] %v2109_v31  ;;  %v2113_v12 = vpop.f32.mrb[11].mxu1 }
 0x751   : > { %2116 = vst [vmem:[%s719_s1 + $0x8] sm:$0xff] %v2111_v1 }
 0x752   : > { %3088 = shalt.err (!%p3085_p12)
}
 0x753   : > { %s3089_s22 = scalar_lea.hbm %s4024_s18, 256  ;;  %s3093_s23 = scalar_lea.hbm %s4140_s25, 512 }
 0x754   : > { %p3090_p3 = scmp.ne.s32.totalorder %s4024_s18, %s3089_s22  ;;  %p3094_p2 = scmp.lt.u32.totalorder %s4024_s18, %s4140_s25 }
 0x755   : > { %p3095_p10 = scmp.lt.u32.totalorder %s3093_s23, %s3089_s22  ;;  %p3097_p7 = scmp.lt.u32.totalorder %s3089_s22, %s4024_s18 }
 0x756   : > { %p3091_p13 = pnand %p3090_p3, %p4138_p4 }
 0x757   : > { %p3096_p5 = por %p3095_p10, %p3094_p2 }
 0x758   : > { %p3092_p0 = pneg %p3091_p13 }
 0x759   : > { %p3098_p8 = por %p3097_p7, %p3096_p5 }
 0x75b   : > { %p3099_p6 = pnand %p3098_p8, %p3092_p0 }
 0x75d   : > { %3102 = shalt.err (!%p3099_p6)
}
 0x75e   : > { %2652 = dma.vmem_to_hbm [thread:$0]  (%p4138_p4), %s4026_s14, 256, %s4024_s18, %s2193_s20  }
 0x75f PF: > { %s2244_s10 = sand.u32 1, %s3149_s29   ;;  %p4141_p11 = scmp.ne.s32.totalorder %s4121_s16, 0 }
 0x760   : > { %p4142_p1 = scmp.ge.s32.totalorder %s3161_s19, 2  ;;  %s2245_s1 = scalar_lea.sflag [#allocation5], %s2244_s10 }
 0x762   : > { %p2677_p9 = pnand %p4142_p1, %p4141_p11 }
 0x764   : > { %3140 = dma.done.wait (!%p2677_p9), %s2245_s1, 256  }
 0x765   : > { %3142 = vsyncadd (!%p2677_p9), %s2245_s1, 4294967040  ;;  %s2254_s28 = scalar_lea.sflag [#allocation16], %s2244_s10 }
 0x766   : > { %3144 = dma.done.wait (!%p2677_p9), %s2254_s28, 128  }
 0x767   : > { %3146 = vsyncadd (!%p2677_p9), %s2254_s28, 4294967168  ;;  %s4143_s24 = sld [smem:[#allocation24_spill]]  ;;  %s4144_s0 = sld [smem:[#allocation25_spill]] }
 0x768   : > { %p42_p4 = scmp.ge.s32.totalorder %s3426_s12, 4   ;;  %s4145_s29 = smov %s3153_s30 }
 0x769   : > { %s4147_s19 = smov %s3426_s12 }
 0x76a   :  { %44 = sbr.rel (!%p42_p4) target bundleno = 25 (0x19), region = 193 }
 0x76d   : > { %s4146_s30 = smov %s4143_s24 }
 0x771   :  { %2266 = vsyncpa [#allocation4], 1 }
 0x772   :  { %2268 = vsyncpa [#allocation4 + $0x1], 1 }
 0x773   :  { %2269 = vsyncpa [#allocation7], 1 }
 0x774   :  { %2271 = vsyncpa [#allocation7 + $0x1], 1 }
 0x775   :  { %2272 = vsyncpa [#allocation10], 1 }
 0x776   :  { %2273 = vsyncpa [#allocation13], 1 }
 0x777   :  { %2274 = vsyncpa [#allocation5], 1 }
 0x778   :  { %2276 = vsyncpa [#allocation5 + $0x1], 1 }
 0x779   :  { %2277 = vsyncpa [#allocation16], 1 }
 0x77a   :  { %2279 = vsyncpa [#allocation16 + $0x1], 1 }

</bundles_post_ra>
